<compile_context>
chip_gen: v7x
topology: tpu7x:2x2x1
jax: 0.10.0
libtpu: 0.0.40
codegen_flags: <defaults>
</compile_context>

<pallas_src>
import math

import jax
import jax.numpy as jnp
from jax.experimental import pallas as pl
from jax.experimental.pallas import tpu as pltpu

LANE = 128


def _round_up(x, m):
    return ((x + m - 1) // m) * m


def _leaky_relu(x, slope=0.2):
    return jnp.where(x > 0, x, slope * x)


# --------------------------------------------------------------------------
# Phase 1: per-node projections h2, a1, a2 (computed once, never per adj tile)
# --------------------------------------------------------------------------
def _proj_kernel(x0_ref, wcat_ref, bcat_ref, wa1_ref, wa2_ref, ba_ref,
                 h2_ref, a1_ref, a2_ref):
    d_pad = wa1_ref.shape[1]
    x = x0_ref[...]                                            # [bi, d_pad] f32
    # Single fused MXU pass for both linear layers (weights pre-transposed).
    hcat = jnp.dot(x, wcat_ref[...], preferred_element_type=jnp.float32)
    hcat = _leaky_relu(hcat + bcat_ref[...])
    h1 = hcat[:, :d_pad]
    h2 = hcat[:, d_pad:]
    # Attention scores on VPU/XLU (row reduce) — keeps the MXU free.
    a1 = jnp.sum(h1 * wa1_ref[...], axis=-1, keepdims=True) + ba_ref[0]
    a2 = jnp.sum(h2 * wa2_ref[...], axis=-1, keepdims=True) + ba_ref[1]
    h2_ref[...] = h2.astype(h2_ref.dtype)                      # bf16 for phase 2
    a1_ref[...] = a1
    a2_ref[...] = a2


# --------------------------------------------------------------------------
# Phase 2: tiled masked attention  out = (sigmoid(a1 + a2^T) * mask) @ h2 + x0
# --------------------------------------------------------------------------
def _attn_kernel(mask_ref, a1_ref, a2_ref, h2_ref, x0_ref, out_ref):
    j = pl.program_id(1)

    @pl.when(j == 0)
    def _():
        out_ref[...] = x0_ref[...]                    # residual init; block is resident over j

    logits = a1_ref[...] + a2_ref[...]                # [bi,1] + [1,bj] -> [bi,bj]
    att = pl.reciprocal(1.0 + jnp.exp(-logits), approx=True)   # sigmoid on EUP
    att = att * mask_ref[...].astype(jnp.float32)     # int8 0/1 mask
    out_ref[...] += jnp.dot(att.astype(jnp.bfloat16), h2_ref[...],
                            preferred_element_type=jnp.float32)


# --------------------------------------------------------------------------
# Wrapper
# --------------------------------------------------------------------------
def gat_layer_regular(x0, x1, adj, params, *, block_i=256, block_j=512):
    """Pallas implementation of GATLayer_regular.forward (x1 unused, as in PyTorch)."""
    del x1
    n, d = x0.shape
    f32 = jnp.float32
    d_pad = _round_up(d, LANE)
    n_pad = _round_up(n, math.lcm(block_i, block_j))

    # ---- layout plumbing (once, in JAX) ----
    x0_pad = jnp.zeros((n_pad, d_pad), f32).at[:n, :d].set(x0.astype(f32))
    mask = jnp.zeros((n_pad, n_pad), jnp.int8).at[:n, :n].set(
        (adj != 0).astype(jnp.int8))

    # PyTorch stores W as [out, in]; pre-transpose and fuse W1|W2 -> [d_pad, 2*d_pad].
    wcat = jnp.zeros((d_pad, 2 * d_pad), f32)
    wcat = wcat.at[:d, :d].set(params["w1"].T.astype(f32))
    wcat = wcat.at[:d, d_pad:d_pad + d].set(params["w2"].T.astype(f32))
    bcat = jnp.zeros((1, 2 * d_pad), f32)
    bcat = bcat.at[:, :d].set(params["b1"].astype(f32))
    bcat = bcat.at[:, d_pad:d_pad + d].set(params["b2"].astype(f32))
    wa1 = jnp.zeros((1, d_pad), f32).at[:, :d].set(params["wa1"].astype(f32))
    wa2 = jnp.zeros((1, d_pad), f32).at[:, :d].set(params["wa2"].astype(f32))
    ba = jnp.concatenate([params["ba1"].reshape(-1),
                          params["ba2"].reshape(-1)]).astype(f32)   # (2,) -> SMEM

    # ---- phase 1: projections ----
    grid_i = n_pad // block_i
    h2, a1, a2 = pl.pallas_call(
        _proj_kernel,
        out_shape=(
            jax.ShapeDtypeStruct((n_pad, d_pad), jnp.bfloat16),
            jax.ShapeDtypeStruct((n_pad, 1), f32),
            jax.ShapeDtypeStruct((n_pad, 1), f32),
        ),
        grid_spec=pltpu.PrefetchScalarGridSpec(
            num_scalar_prefetch=0,
            grid=(grid_i,),
            in_specs=[
                pl.BlockSpec((block_i, d_pad), lambda i: (i, 0)),
                pl.BlockSpec((d_pad, 2 * d_pad), lambda i: (0, 0)),
                pl.BlockSpec((1, 2 * d_pad), lambda i: (0, 0)),
                pl.BlockSpec((1, d_pad), lambda i: (0, 0)),
                pl.BlockSpec((1, d_pad), lambda i: (0, 0)),
                pl.BlockSpec(memory_space=pltpu.MemorySpace.SMEM),
            ],
            out_specs=[
                pl.BlockSpec((block_i, d_pad), lambda i: (i, 0)),
                pl.BlockSpec((block_i, 1), lambda i: (i, 0)),
                pl.BlockSpec((block_i, 1), lambda i: (i, 0)),
            ],
        ),
        compiler_params=pltpu.CompilerParams(
            dimension_semantics=("parallel",)),
    )(x0_pad, wcat, bcat, wa1, wa2, ba)

    a2_row = a2.reshape(1, n_pad)   # lane-dense [1, n_pad] for j-tiling

    # ---- phase 2: tiled masked attention + residual ----
    grid = (n_pad // block_i, n_pad // block_j)
    out_pad = pl.pallas_call(
        _attn_kernel,
        out_shape=jax.ShapeDtypeStruct((n_pad, d_pad), f32),
        grid_spec=pltpu.PrefetchScalarGridSpec(
            num_scalar_prefetch=0,
            grid=grid,
            in_specs=[
                pl.BlockSpec((block_i, block_j), lambda i, j: (i, j)),  # adj mask (int8)
                pl.BlockSpec((block_i, 1), lambda i, j: (i, 0)),        # a1
                pl.BlockSpec((1, block_j), lambda i, j: (0, j)),        # a2 row
                pl.BlockSpec((block_j, d_pad), lambda i, j: (j, 0)),    # h2 (bf16)
                pl.BlockSpec((block_i, d_pad), lambda i, j: (i, 0)),    # x0 residual
            ],
            out_specs=pl.BlockSpec((block_i, d_pad), lambda i, j: (i, 0)),
        ),
        compiler_params=pltpu.CompilerParams(
            dimension_semantics=("parallel", "arbitrary")),
    )(mask, a1, a2_row, h2, x0_pad)

    return out_pad[:n, :d]


# --------------------------------------------------------------------------
# Reference + params
# --------------------------------------------------------------------------
def reference(x0, adj, params):
    h1 = _leaky_relu(x0 @ params["w1"].T + params["b1"])
    h2 = _leaky_relu(x0 @ params["w2"].T + params["b2"])
    a1 = h1 @ params["wa1"].T + params["ba1"]
    a2 = h2 @ params["wa2"].T + params["ba2"]
    att = jax.nn.sigmoid(a1 + a2.T)
    att = jnp.where(adj != 0.0, att, 0.0)
    return att @ h2 + x0


def init_params(key, input_size, output_size):
    ks = jax.random.split(key, 8)
    lim1 = 1.0 / jnp.sqrt(input_size)
    lim2 = 1.0 / jnp.sqrt(output_size)
    u = lambda k, shape, lim: jax.random.uniform(k, shape, jnp.float32, -lim, lim)
    return {
        "w1": u(ks[0], (output_size, input_size), lim1),
        "b1": u(ks[1], (1, output_size), lim1),
        "w2": u(ks[2], (output_size, input_size), lim1),
        "b2": u(ks[3], (1, output_size), lim1),
        "wa1": u(ks[4], (1, output_size), lim2),
        "ba1": u(ks[5], (1, 1), lim2),
        "wa2": u(ks[6], (1, output_size), lim2),
        "ba2": u(ks[7], (1, 1), lim2),
    }


if __name__ == "__main__":
    # Small shapes: n = 700 nodes (exercises padding + a (4, 2) grid with the
    # default 256 x 512 tiles), input_size = output_size = 32 (residual needs equality).
    n, d = 700, 32
    key = jax.random.PRNGKey(0)
    k_x, k_adj, k_x1, k_p = jax.random.split(key, 4)

    x0 = jax.random.normal(k_x, (n, d), jnp.float32)
    x1 = jax.random.normal(k_x1, (n, d), jnp.float32)  # unused by forward (parity only)
    # Sparse-ish adjacency: ~40% nonzero; only the nonzero pattern matters (as in PyTorch).
    adj = (jax.random.uniform(k_adj, (n, n)) < 0.4).astype(jnp.float32)

    params = init_params(k_p, d, d)

    out = gat_layer_regular(x0, x1, adj, params)
    out = jax.block_until_ready(out)
    assert out.shape == (n, d)

    # Full-f32 reference; kernel uses bf16 MXU inputs for att @ h2 (f32 accumulation),
    # so compare with a norm-relative tolerance consistent with bf16 rounding.
    ref = reference(x0, adj, params)
    rel_err = float(jnp.max(jnp.abs(out - ref)) / jnp.max(jnp.abs(ref)))
    assert rel_err < 1e-2, f"mismatch vs JAX reference: rel_err={rel_err}"

    print("KERNEL_OK")
</pallas_src>

<mosaic_0001>
module attributes {stable_mosaic.version = 11 : i64} {
  func.func @_proj_kernel(%arg0: i32, %arg1: memref<256x128xf32, #tpu.memory_space<vmem>>, %arg2: memref<128x256xf32, #tpu.memory_space<vmem>>, %arg3: memref<1x256xf32, #tpu.memory_space<vmem>>, %arg4: memref<1x128xf32, #tpu.memory_space<vmem>>, %arg5: memref<1x128xf32, #tpu.memory_space<vmem>>, %arg6: memref<2xf32, #tpu.memory_space<smem>>, %arg7: memref<256x128xbf16, #tpu.memory_space<vmem>>, %arg8: memref<256x1xf32, #tpu.memory_space<vmem>>, %arg9: memref<256x1xf32, #tpu.memory_space<vmem>>) attributes {dimension_semantics = [#tpu.dimension_semantics<parallel>], iteration_bounds = array<i64: 4>, scalar_prefetch = 0 : i64, scratch_operands = 0 : i64, tpu.core_type = #tpu.core_type<tc>, window_params = [{transform_indices = @transform_0, window_bounds = array<i64: 256, 128>}, {pipeline_mode = #tpu.pipeline_mode<synchronous>, transform_indices = @transform_1, window_bounds = array<i64: 128, 256>}, {pipeline_mode = #tpu.pipeline_mode<synchronous>, transform_indices = @transform_2, window_bounds = array<i64: 1, 256>}, {pipeline_mode = #tpu.pipeline_mode<synchronous>, transform_indices = @transform_3, window_bounds = array<i64: 1, 128>}, {pipeline_mode = #tpu.pipeline_mode<synchronous>, transform_indices = @transform_4, window_bounds = array<i64: 1, 128>}, {transform_indices = @transform_5, window_bounds = array<i64: 2>}, {transform_indices = @transform_6, window_bounds = array<i64: 256, 128>}, {transform_indices = @transform_7, window_bounds = array<i64: 256, 1>}, {transform_indices = @transform_8, window_bounds = array<i64: 256, 1>}]} {
    %c0 = arith.constant 0 : index
    %c0_0 = arith.constant 0 : index
    %0 = vector.load %arg1[%c0, %c0_0] : memref<256x128xf32, #tpu.memory_space<vmem>>, vector<256x128xf32>
    %c0_1 = arith.constant 0 : index
    %c0_2 = arith.constant 0 : index
    %1 = vector.load %arg2[%c0_1, %c0_2] : memref<128x256xf32, #tpu.memory_space<vmem>>, vector<128x256xf32>
    %cst = arith.constant dense<0.000000e+00> : vector<256x256xf32>
    %2 = tpu.matmul %0, %1, %cst {dimension_numbers = #tpu.dot_dimension_numbers<[1], [0], [0], [1], [0, 0, 1, 1], [], []>} : vector<256x128xf32>, vector<128x256xf32>, vector<256x256xf32> -> vector<256x256xf32>
    %c0_3 = arith.constant 0 : index
    %c0_4 = arith.constant 0 : index
    %3 = vector.load %arg3[%c0_3, %c0_4] : memref<1x256xf32, #tpu.memory_space<vmem>>, vector<1x256xf32>
    %4 = vector.broadcast %3 : vector<1x256xf32> to vector<256x256xf32>
    %5 = arith.addf %2, %4 : vector<256x256xf32>
    %cst_5 = arith.constant 0.000000e+00 : f32
    %6 = vector.broadcast %cst_5 : f32 to vector<256x256xf32>
    %7 = arith.cmpf ogt, %5, %6 : vector<256x256xf32>
    %cst_6 = arith.constant 2.000000e-01 : f32
    %8 = vector.broadcast %cst_6 : f32 to vector<256x256xf32>
    %9 = arith.mulf %8, %5 : vector<256x256xf32>
    %10 = arith.select %7, %5, %9 : vector<256x256xi1>, vector<256x256xf32>
    %11 = vector.extract_strided_slice %10 {offsets = [0, 0], sizes = [256, 128], strides = [1, 1]} : vector<256x256xf32> to vector<256x128xf32>
    %12 = vector.extract_strided_slice %10 {offsets = [0, 128], sizes = [256, 128], strides = [1, 1]} : vector<256x256xf32> to vector<256x128xf32>
    %c0_7 = arith.constant 0 : index
    %c0_8 = arith.constant 0 : index
    %13 = vector.load %arg4[%c0_7, %c0_8] : memref<1x128xf32, #tpu.memory_space<vmem>>, vector<1x128xf32>
    %14 = vector.broadcast %13 : vector<1x128xf32> to vector<256x128xf32>
    %15 = arith.mulf %11, %14 : vector<256x128xf32>
    %cst_9 = arith.constant dense<0.000000e+00> : vector<256xf32>
    %16 = vector.multi_reduction <add>, %15, %cst_9 [1] : vector<256x128xf32> to vector<256xf32>
    %17 = vector.shape_cast %16 : vector<256xf32> to vector<256x1xf32>
    %c0_10 = arith.constant 0 : index
    %18 = memref.load %arg6[%c0_10] : memref<2xf32, #tpu.memory_space<smem>>
    %19 = vector.broadcast %18 : f32 to vector<256x1xf32>
    %20 = arith.addf %17, %19 : vector<256x1xf32>
    %c0_11 = arith.constant 0 : index
    %c0_12 = arith.constant 0 : index
    %21 = vector.load %arg5[%c0_11, %c0_12] : memref<1x128xf32, #tpu.memory_space<vmem>>, vector<1x128xf32>
    %22 = vector.broadcast %21 : vector<1x128xf32> to vector<256x128xf32>
    %23 = arith.mulf %12, %22 : vector<256x128xf32>
    %cst_13 = arith.constant dense<0.000000e+00> : vector<256xf32>
    %24 = vector.multi_reduction <add>, %23, %cst_13 [1] : vector<256x128xf32> to vector<256xf32>
    %25 = vector.shape_cast %24 : vector<256xf32> to vector<256x1xf32>
    %c1 = arith.constant 1 : index
    %26 = memref.load %arg6[%c1] : memref<2xf32, #tpu.memory_space<smem>>
    %27 = vector.broadcast %26 : f32 to vector<256x1xf32>
    %28 = arith.addf %25, %27 : vector<256x1xf32>
    %29 = arith.truncf %12 : vector<256x128xf32> to vector<256x128xbf16>
    %c0_14 = arith.constant 0 : index
    %c0_15 = arith.constant 0 : index
    %30 = vector.load %arg7[%c0_14, %c0_15] : memref<256x128xbf16, #tpu.memory_space<vmem>>, vector<256x128xbf16>
    tpu.vector_store %arg7[%c0_14, %c0_15], %29 {strides = array<i32>} : memref<256x128xbf16, #tpu.memory_space<vmem>>, vector<256x128xbf16>,
    %c0_16 = arith.constant 0 : index
    %c0_17 = arith.constant 0 : index
    %31 = vector.load %arg8[%c0_16, %c0_17] : memref<256x1xf32, #tpu.memory_space<vmem>>, vector<256x1xf32>
    tpu.vector_store %arg8[%c0_16, %c0_17], %20 {strides = array<i32>} : memref<256x1xf32, #tpu.memory_space<vmem>>, vector<256x1xf32>,
    %c0_18 = arith.constant 0 : index
    %c0_19 = arith.constant 0 : index
    %32 = vector.load %arg9[%c0_18, %c0_19] : memref<256x1xf32, #tpu.memory_space<vmem>>, vector<256x1xf32>
    tpu.vector_store %arg9[%c0_18, %c0_19], %28 {strides = array<i32>} : memref<256x1xf32, #tpu.memory_space<vmem>>, vector<256x1xf32>,
    return
  }
  func.func @transform_0(%arg0: i32) -> (i32, i32) {
    %c0_i32 = arith.constant 0 : i32
    %c0_i32_0 = arith.constant 0 : i32
    return %arg0, %c0_i32 : i32, i32
  }
  func.func @transform_1(%arg0: i32) -> (i32, i32) {
    %c0_i32 = arith.constant 0 : i32
    %c0_i32_0 = arith.constant 0 : i32
    %c0_i32_1 = arith.constant 0 : i32
    return %c0_i32, %c0_i32_0 : i32, i32
  }
  func.func @transform_2(%arg0: i32) -> (i32, i32) {
    %c0_i32 = arith.constant 0 : i32
    %c0_i32_0 = arith.constant 0 : i32
    %c0_i32_1 = arith.constant 0 : i32
    return %c0_i32, %c0_i32_0 : i32, i32
  }
  func.func @transform_3(%arg0: i32) -> (i32, i32) {
    %c0_i32 = arith.constant 0 : i32
    %c0_i32_0 = arith.constant 0 : i32
    %c0_i32_1 = arith.constant 0 : i32
    return %c0_i32, %c0_i32_0 : i32, i32
  }
  func.func @transform_4(%arg0: i32) -> (i32, i32) {
    %c0_i32 = arith.constant 0 : i32
    %c0_i32_0 = arith.constant 0 : i32
    %c0_i32_1 = arith.constant 0 : i32
    return %c0_i32, %c0_i32_0 : i32, i32
  }
  func.func @transform_5(%arg0: i32) -> i32 {
    %c0_i32 = arith.constant 0 : i32
    %c0_i32_0 = arith.constant 0 : i32
    return %c0_i32 : i32
  }
  func.func @transform_6(%arg0: i32) -> (i32, i32) {
    %c0_i32 = arith.constant 0 : i32
    %c0_i32_0 = arith.constant 0 : i32
    return %arg0, %c0_i32 : i32, i32
  }
  func.func @transform_7(%arg0: i32) -> (i32, i32) {
    %c0_i32 = arith.constant 0 : i32
    %c0_i32_0 = arith.constant 0 : i32
    return %arg0, %c0_i32 : i32, i32
  }
  func.func @transform_8(%arg0: i32) -> (i32, i32) {
    %c0_i32 = arith.constant 0 : i32
    %c0_i32_0 = arith.constant 0 : i32
    return %arg0, %c0_i32 : i32, i32
  }
}

</mosaic_0001>

<bundles_post_ra>
// kernel: tpu_custom_call.1
= control target key start
LH: loop header
LB: loop body
LE: loop exit
PB: predicated region body
PF: predicated region fallthrough
CT: control target
= control target key end

     0   :  { %14 = vsyncpa [#allocation3], 0  ;;  %s2959_s0 = inlined_call_operand.hbm [shape: f32[1024,128], index: 0, kind: input, shape index: {}]   ;;  %s2960_s1 = inlined_call_operand.hbm [shape: f32[128,256], index: 1, kind: input, shape index: {}]   ;;  %s2961_s2 = inlined_call_operand.vmem [shape: f32[1,256], index: 2, kind: input, shape index: {}]   ;;  %s2962_s3 = inlined_call_operand.vmem [shape: f32[1,128], index: 3, kind: input, shape index: {}]   ;;  %s2963_s4 = inlined_call_operand.vmem [shape: f32[1,128], index: 4, kind: input, shape index: {}]   ;;  %s2964_s5 = inlined_call_operand.vmem [shape: f32[2], index: 5, kind: input, shape index: {}]   ;;  %s2965_s6 = inlined_call_operand.hbm [shape: bf16[1024,128], index: 6, kind: output, shape index: {0}]   ;;  %s2966_s7 = inlined_call_operand.vmem [shape: f32[1024,1], index: 7, kind: output, shape index: {1}]   ;;  %s2967_s8 = inlined_call_operand.vmem [shape: f32[1024,1], index: 8, kind: output, shape index: {2}]  }
   0x1   :  { %16 = vsyncpa [#allocation3 + $0x1], 0 }
   0x2   :  { %17 = vsyncpa [#allocation7], 0 }
   0x3   :  { %18 = vsyncpa [#allocation5], 0 }
   0x4   :  { %19 = vsyncpa [#allocation4], 0 }
   0x5   :  { %21 = vsyncpa [#allocation4 + $0x1], 0  ;;  %s2096_s27 = smov 0   ;;  %s2098_s28 = smov 0  }
   0x6   :  { %s2100_s29 = smov 0   ;;  %s2102_s30 = smov 0  }
   0x7 LB: > { %s2117_s9 = sadd.s32 4294967295, %s2038_s30   ;;  %s1583_s10 = sadd.s32 4294967294, %s2038_s30   ;;  %s2038_s30 = sphi %s2102_s30, %s2990_s30   ;;  %s2034_s29 = sphi %s2100_s29, %s2989_s29   ;;  %s2030_s28 = sphi %s2098_s28, %s2988_s28   ;;  %s2026_s27 = sphi %s2096_s27, %s2987_s27  }
   0x8   : > { %p47_p0 = scmp.ne.s32.totalorder %s2030_s28, %s2026_s27  ;;  %p2968_p1 = scmp.eq.s32.totalorder %s2117_s9, 0 }
   0x9   : > { %p182_p3 = scmp.eq.s32.totalorder %s1583_s10, 3  ;;  %p1584_p5 = scmp.ge.s32.totalorder %s2038_s30, 1 }
   0xa   : > { %p2126_p4 = por %p2968_p1, %p47_p0  ;;  %p241_p7 = scmp.lt.s32.totalorder %s2038_s30, 5 }
   0xb   : > { %p2131_p6 = por %p182_p3, %p47_p0  ;;  %s2040_s14 = smov [#allocation6]  }
   0xc   : > { %s2972_s11 = scalar_select %p2126_p4, 1, 0 }
   0xd   : > { %s2973_s12 = scalar_select %p2131_p6, 1, 0 }
   0xe   : > { %p2136_p8 = pnand %p1584_p5, %p241_p7  ;;  %s253_s15 = sshll.u32 %s2040_s14, 4  ;;  %s254_s15 = int_to_ptr.vmem [resolvable:$true] %s253_s15 }
   0xf   : > { %s276_s18 = sshll.u32 %s2964_s5, 4  ;;  %s1891_s22 = scalar_lea.hbm %s2960_s1, 4096  ;;  %s2151_s18 = int_to_ptr.vmem [resolvable:$true] %s276_s18 }
  0x10   : > { %s2974_s13 = scalar_select %p2136_p8, 1, 0 }
  0x11   : > { %p1829_p9 = pneg %p2136_p8  ;;  %p1892_p11 = scmp.ne.s32.totalorder %s2960_s1, %s1891_s22 }
  0x12   : > { %p1898_p3 = scmp.lt.u32.totalorder %s1891_s22, %s2960_s1 }
  0x13   : > { %p2147_p10 = pnand %p1829_p9, %p2968_p1 }
  0x15   : > { %p1893_p12 = pneg %p2147_p10 }
  0x17   : > { %p1894_p13 = pnand %p1893_p12, %p1892_p11 }
  0x19   : > { %p1895_p0 = pneg %p1894_p13 }
  0x1b   : > { %p1900_p5 = pnand %p1898_p3, %p1895_p0 }
  0x1d   : > { %1903 = shalt.err (!%p1900_p5)
}
  0x1e   : > { %s1904_s10 = scalar_lea.vmem %s254_s15, 4096  ;;  %p1912_p2 = scmp.lt.s32.totalorder %s254_s15, %s254_s15 }
  0x1f   : > { %p1905_p7 = scmp.ne.s32.totalorder %s254_s15, %s1904_s10  ;;  %p1913_p6 = scmp.lt.s32.totalorder %s1904_s10, %s1904_s10 }
  0x21   : > { %p1907_p9 = pnand %p1905_p7, %p1893_p12  ;;  %p1914_p4 = por %p1913_p6, %p1912_p2 }
  0x23   : > { %p1908_p1 = pneg %p1907_p9 }
  0x25   : > { %p1915_p8 = pnand %p1914_p4, %p1908_p1 }
  0x27   : > { %1918 = shalt.err (!%p1915_p8)
}
  0x28   : > { %s2041_s14 = smov 256   ;;  %s2042_s16 = smov 16  }
  0x29   : > { %1832 = dma.hbm_to_vmem [thread:$0]  (!%p2147_p10), %s2960_s1, 4096, %s254_s15, [#allocation7], %s2041_s14, %s2041_s14, %s2042_s16  }
  0x2a   : > { %s1919_s21 = scalar_lea.vmem %s2151_s18, 16  ;;  %p1927_p1 = scmp.lt.s32.totalorder %s2151_s18, %s2151_s18 }
  0x2b   : > { %p1920_p11 = scmp.ne.s32.totalorder %s2151_s18, %s1919_s21  ;;  %p1928_p4 = scmp.lt.s32.totalorder %s1919_s21, %s1919_s21 }
  0x2d   : > { %p1922_p13 = pnand %p1920_p11, %p1893_p12  ;;  %p1929_p6 = por %p1928_p4, %p1927_p1 }
  0x2f   : > { %p1923_p2 = pneg %p1922_p13 }
  0x31   : > { %p1930_p8 = pnand %p1929_p6, %p1923_p2 }
  0x33   : > { %1933 = shalt.err (!%p1930_p8)
}
  0x34   : > { %s2043_s22 = smov [#allocation8]   ;;  %s2186_s15 = sadd.s32 1, %s2038_s30  }
  0x35   : > { %1835 = dma.vmem_to_smem (!%p2147_p10), %s2151_s18, 16, %s2043_s22, [#allocation5]  }
  0x36   : > { %s34_s23 = sadd.s32 1, %s2034_s29  ;;  %s31_s24 = ssub.s32 %s2038_s30, %s2186_s15 }
  0x37   : > { %p41_p12 = scmp.ne.s32.totalorder %s2034_s29, %s2030_s28  ;;  %p32_p0 = scmp.eq.s32.totalorder %s31_s24, 0 }
  0x38   : > { %p42_p3 = scmp.eq.s32.totalorder %s2038_s30, 0  ;;  %p2976_p5 = scmp.eq.s32.totalorder %s2117_s9, 3 }
  0x39   : > { %p1846_p9 = scmp.lt.s32.totalorder %s2038_s30, 4  ;;  %s287_s26 = sand.u32 1, %s2034_s29  }
  0x3a   : > { %p2196_p7 = por %p2976_p5, %p41_p12  ;;  %p43_p11 = por %p42_p3, %p41_p12 }
  0x3b   : > { %s2202_s25 = scalar_select %p32_p0, %s2034_s29, %s34_s23  }
  0x3c   : > { %s1588_s10 = sshll.u32 %s287_s26, 8  ;;  %s1640_s18 = sshll.u32 %s2038_s30, 12 }
  0x3d   : > { %s2209_s17 = scalar_lea.hbm %s2959_s0, %s1640_s18  ;;  %s291_s20 = scalar_lea.vmem [#allocation2], %s1588_s10 }
  0x3e   : > { %s298_s21 = sshll.u32 %s291_s20, 4  ;;  %p2213_p10 = pnand %p1846_p9, %p43_p11  ;;  %s2211_s21 = int_to_ptr.vmem [resolvable:$true] %s298_s21 }
  0x3f   : > { %s2217_s23 = scalar_lea.sflag [#allocation3], %s287_s26  ;;  %s1934_s24 = scalar_lea.hbm %s2209_s17, 4096 }
  0x40   : > { %p1935_p13 = scmp.ne.s32.totalorder %s2209_s17, %s1934_s24  ;;  %p1936_p2 = pneg %p2213_p10 }
  0x41   : > { %s1939_s14 = scalar_lea.hbm %s2959_s0, 16384  ;;  %p1940_p6 = scmp.lt.u32.totalorder %s2209_s17, %s2959_s0 }
  0x42   : > { %p1937_p1 = pnand %p1936_p2, %p1935_p13  ;;  %p1941_p8 = scmp.lt.u32.totalorder %s1939_s14, %s1934_s24 }
  0x43   : > { %p1943_p0 = scmp.lt.u32.totalorder %s1934_s24, %s2209_s17 }
  0x44   : > { %p1938_p4 = pneg %p1937_p1  ;;  %p1942_p12 = por %p1941_p8, %p1940_p6 }
  0x46   : > { %p1944_p3 = por %p1943_p0, %p1942_p12 }
  0x48   : > { %p1945_p5 = pnand %p1944_p3, %p1938_p4 }
  0x4a   : > { %1948 = shalt.err (!%p1945_p5)
}
  0x4b   : > { %s1949_s26 = scalar_lea.vmem %s2211_s21, 4096  ;;  %s2044_s10 = smov [#allocation2]  }
  0x4c   : > { %p1950_p9 = scmp.ne.s32.totalorder %s2211_s21, %s1949_s26  ;;  %s1954_s18 = sshll.u32 %s2044_s10, 4  ;;  %s1955_s18 = int_to_ptr.vmem [resolvable:$false] %s1954_s18 }
  0x4d   : > { %s1956_s16 = scalar_lea.vmem %s1955_s18, 8192  ;;  %p1957_p1 = scmp.lt.s32.totalorder %s2211_s21, %s1955_s18 }
  0x4e   : > { %p1952_p11 = pnand %p1950_p9, %p1936_p2  ;;  %p1958_p6 = scmp.lt.s32.totalorder %s1956_s16, %s1949_s26 }
  0x50   : > { %p1953_p13 = pneg %p1952_p11  ;;  %p1959_p8 = por %p1958_p6, %p1957_p1 }
  0x52   : > { %p1960_p12 = pnand %p1959_p8, %p1953_p13 }
  0x54   : > { %1963 = shalt.err (!%p1960_p12)
}
  0x55   : > { %s2045_s24 = smov 128   ;;  %s2046_s14 = smov 8  }
  0x56   : > { %1839 = dma.hbm_to_vmem [thread:$0]  (!%p2213_p10), %s2209_s17, 4096, %s2211_s21, %s2217_s23, %s2045_s24, %s2045_s24, %s2046_s14  }
  0x57   : > { %p2979_p2 = scmp.ne.s32.totalorder %s2974_s13, 0 }
  0x58   : > { %s2248_s20 = sand.u32 (!%p2979_p2), 1, %s2030_s28   ;;  %p2980_p4 = scmp.ne.s32.totalorder (!%p2979_p2), %s2972_s11, 0 }
  0x59   : > { %310 = sbr.rel (%p2979_p2) target bundleno = 645 (0x285), region = 44  ;;  %s1592_s26 = sshll.u32 (!%p2979_p2), %s2248_s20, 8 }
  0x5a   : > { %s313_s10 = scalar_lea.sflag (!%p2979_p2), [#allocation3], %s2248_s20  ;;  %s2252_s18 = scalar_lea.vmem (!%p2979_p2), [#allocation2], %s1592_s26 }
  0x60   : > { %2009 = dma.done.wait (%p2980_p4), %s313_s10, 4096  }
  0x61   : > { %2011 = vsyncadd (%p2980_p4), %s313_s10, 4294963200  ;;  %p2981_p10 = scmp.eq.s32.totalorder %s2117_s9, 0 }
  0x63   : > { %2013 = dma.done.wait (%p2981_p10), [#allocation7], 4096   ;;  %p2982_p0 = pmov %p2981_p10 }
  0x65   : > { %2015 = vsyncadd (%p2982_p0), [#allocation7], 4294963200  ;;  %p2983_p3 = pmov %p2982_p0 }
  0x66   : > { %p2984_p5 = pmov %p2982_p0 }
  0x67   : > { %2017 = dma.done.wait (%p2983_p3), [#allocation5], 16  }
  0x68   : > { %2019 = vsyncadd (%p2984_p5), [#allocation5], 4294967280 }
  0x69   : > { %329 = sfence }
  0x6a   : > { %v415_v0 = vld [vmem:[#allocation6 + $0x8] sm:$0xff]  ;;  %v417_v1 = vld [vmem:[#allocation6 + $0x18] sm:$0xff]  ;;  %v414_v2 = vld [vmem:[#allocation6] sm:$0xff]  ;;  %v2047_v7 = vmov 0.0   ;;  %s1595_s22 = sshll.u32 %s2248_s20, 7  ;;  %s1596_s14 = sshll.u32 %s2117_s9, 5 }
  0x6b   : > { %v1769_v3 = vpack.c.bf16 %v417_v1, %v415_v0  ;;  %v416_v4 = vld [vmem:[#allocation6 + $0x10] sm:$0xff]  ;;  %v419_v5 = vld [vmem:[#allocation6 + $0x28] sm:$0xff]  ;;  %v421_v6 = vld [vmem:[#allocation6 + $0x38] sm:$0xff]  ;;  %522 = vmatprep.mubr.f32.mxu0 %v2047_v7  ;;  %618 = vmatprep.mubr.f32.mxu1 %v2047_v7  ;;  %s2364_s24 = scalar_lea.vmem [#allocation9], %s1595_s22  ;;  %p371_p9 = scmp.lt.s32.totalorder %s1596_s14, 127 }
  0x6c   : > { %v1771_v8 = vpack.c.bf16 %v416_v4, %v414_v2  ;;  %v1773_v9 = vpack.c.bf16 %v421_v6, %v419_v5  ;;  %v418_v10 = vld [vmem:[#allocation6 + $0x20] sm:$0xff]  ;;  %v420_v11 = vld [vmem:[#allocation6 + $0x30] sm:$0xff]  ;;  %v423_v12 = vld [vmem:[#allocation6 + $0x48] sm:$0xff]  ;;  %s1010_s26 = sld [smem:[#allocation8]]  ;;  %s1673_s21 = sshll.u32 %s2117_s9, 11 }
  0x6d   : > { %1770 = vmatprep.subr.bf16.mxu0 %v1769_v3  ;;  %1801 = vmatprep.subr.bf16.mxu1 %v1769_v3  ;;  %v425_v13 = vld [vmem:[#allocation6 + $0x58] sm:$0xff]  ;;  %v1775_v14 = vpack.c.bf16 %v420_v11, %v418_v10  ;;  %v422_v16 = vld [vmem:[#allocation6 + $0x40] sm:$0xff]  ;;  %v424_v17 = vld [vmem:[#allocation6 + $0x50] sm:$0xff]  ;;  %s2992_s14 = smov (!%p371_p9, %s1596_s14), 127  ;;  %s2715_s16 = scalar_lea.hbm %s2965_s6, %s1673_s21 }
  0x6e   : > { %1772 = vmatpush1.bf16.msra.mxu0 %v1771_v8  ;;  %1809 = vmatpush1.bf16.msra.mxu1 %v1771_v8  ;;  %v1777_v15 = vpack.c.bf16 %v425_v13, %v423_v12  ;;  %v427_v18 = vld [vmem:[#allocation6 + $0x68] sm:$0xff]  ;;  %v429_v19 = vld [vmem:[#allocation6 + $0x78] sm:$0xff]  ;;  %v1779_v20 = vpack.c.bf16 %v424_v17, %v422_v16  ;;  %v426_v22 = vld [vmem:[#allocation6 + $0x60] sm:$0xff]  ;;  %s2971_s10 = sshll.u32 %s2992_s14, 3  ;;  %s1407_s9 = scalar_lea.sflag [#allocation4], %s2248_s20 }
  0x6f   : > { %1774 = vmatprep.subr.bf16.mxu0 %v1773_v9  ;;  %1802 = vmatprep.subr.bf16.mxu1 %v1773_v9  ;;  %v1781_v21 = vpack.c.bf16 %v429_v19, %v427_v18  ;;  %v428_v23 = vld [vmem:[#allocation6 + $0x70] sm:$0xff]  ;;  %v431_v24 = vld [vmem:[#allocation6 + $0x88] sm:$0xff]  ;;  %v433_v25 = vld [vmem:[#allocation6 + $0x98] sm:$0xff]  ;;  %v448_v18 = vlaneseq  ;;  %s2706_s17 = scalar_lea.vmem %s2966_s7, %s2971_s10 }
  0x70   : > { %v1783_v26 = vpack.c.bf16 %v428_v23, %v426_v22  ;;  %v1785_v27 = vpack.c.bf16 %v433_v25, %v431_v24  ;;  %v430_v28 = vld [vmem:[#allocation6 + $0x80] sm:$0xff]  ;;  %v432_v29 = vld [vmem:[#allocation6 + $0x90] sm:$0xff]  ;;  %v435_v30 = vld [vmem:[#allocation6 + $0xa8] sm:$0xff] }
  0x71   : > { %v437_v31 = vld [vmem:[#allocation6 + $0xb8] sm:$0xff]  ;;  %v1787_v32 = vpack.c.bf16 %v432_v29, %v430_v28  ;;  %v434_v34 = vld [vmem:[#allocation6 + $0xa0] sm:$0xff]  ;;  %v436_v35 = vld [vmem:[#allocation6 + $0xb0] sm:$0xff]  ;;  %v449_v19 = vshrl.u32 %v448_v18, 7 }
  0x72   : > { %1776 = vmatpush1.bf16.msra.mxu0 %v1775_v14  ;;  %1810 = vmatpush1.bf16.msra.mxu1 %v1775_v14  ;;  %v1789_v33 = vpack.c.bf16 %v437_v31, %v435_v30  ;;  %v439_v36 = vld [vmem:[#allocation6 + $0xc8] sm:$0xff]  ;;  %v441_v37 = vld [vmem:[#allocation6 + $0xd8] sm:$0xff]  ;;  %v1791_v38 = vpack.c.bf16 %v436_v35, %v434_v34  ;;  %v438_v40 = vld [vmem:[#allocation6 + $0xc0] sm:$0xff] }
  0x73   : > { %1778 = vmatprep.subr.bf16.mxu0 %v1777_v15  ;;  %1803 = vmatprep.subr.bf16.mxu1 %v1777_v15  ;;  %v1793_v39 = vpack.c.bf16 %v441_v37, %v439_v36  ;;  %v440_v41 = vld [vmem:[#allocation6 + $0xd0] sm:$0xff]  ;;  %v443_v42 = vld [vmem:[#allocation6 + $0xe8] sm:$0xff]  ;;  %v445_v43 = vld [vmem:[#allocation6 + $0xf8] sm:$0xff]  ;;  %v454_v22 = vsub.s32 1, %v449_v19 }
  0x74   : > { %v1795_v44 = vpack.c.bf16 %v440_v41, %v438_v40  ;;  %v1797_v45 = vpack.c.bf16 %v445_v43, %v443_v42  ;;  %v442_v46 = vld [vmem:[#allocation6 + $0xe0] sm:$0xff]  ;;  %v444_v47 = vld [vmem:[#allocation6 + $0xf0] sm:$0xff]  ;;  %v383_v51 = vld [vmem:[%s2252_s18 + $0x8] sm:$0xff] }
  0x75   : > { %v1799_v48 = vpack.c.bf16 %v444_v47, %v442_v46  ;;  %v382_v49 = vld [vmem:[%s2252_s18] sm:$0xff]  ;;  %v399_v52 = vld [vmem:[%s2252_s18 + $0x88] sm:$0xff]  ;;  %v384_v53 = vld [vmem:[%s2252_s18 + $0x10] sm:$0xff] }
  0x76   : > { %1780 = vmatpush1.bf16.msra.mxu0 %v1779_v20  ;;  %1811 = vmatpush1.bf16.msra.mxu1 %v1779_v20  ;;  %v398_v50 = vld [vmem:[%s2252_s18 + $0x80] sm:$0xff]  ;;  %v400_v54 = vld [vmem:[%s2252_s18 + $0x90] sm:$0xff]  ;;  %v385_v55 = vld [vmem:[%s2252_s18 + $0x18] sm:$0xff]  ;;  %v450_v20 = vsub.s32 0, %v449_v19 }
  0x77   : > { %1782 = vmatprep.subr.bf16.mxu0 %v1781_v21  ;;  %1804 = vmatprep.subr.bf16.mxu1 %v1781_v21  ;;  %v401_v56 = vld [vmem:[%s2252_s18 + $0x98] sm:$0xff]  ;;  %v386_v57 = vld [vmem:[%s2252_s18 + $0x20] sm:$0xff]  ;;  %v387_v59 = vld [vmem:[%s2252_s18 + $0x28] sm:$0xff] }
  0x78   : > { %v402_v58 = vld [vmem:[%s2252_s18 + $0xa0] sm:$0xff]  ;;  %v403_v60 = vld [vmem:[%s2252_s18 + $0xa8] sm:$0xff]  ;;  %v388_v61 = vld [vmem:[%s2252_s18 + $0x30] sm:$0xff] }
  0x79   : > { %v404_v62 = vld [vmem:[%s2252_s18 + $0xb0] sm:$0xff]  ;;  %v389_v63 = vld [vmem:[%s2252_s18 + $0x38] sm:$0xff]  ;;  %v390_v1 = vld [vmem:[%s2252_s18 + $0x40] sm:$0xff] }
  0x7a   : > { %1784 = vmatpush1.bf16.msra.mxu0 %v1783_v26  ;;  %1812 = vmatpush1.bf16.msra.mxu1 %v1783_v26  ;;  %v405_v0 = vld [vmem:[%s2252_s18 + $0xb8] sm:$0xff]  ;;  %v406_v2 = vld [vmem:[%s2252_s18 + $0xc0] sm:$0xff]  ;;  %v391_v3 = vld [vmem:[%s2252_s18 + $0x48] sm:$0xff] }
  0x7b   : > { %1786 = vmatprep.subr.bf16.mxu0 %v1785_v27  ;;  %1805 = vmatprep.subr.bf16.mxu1 %v1785_v27  ;;  %v407_v4 = vld [vmem:[%s2252_s18 + $0xc8] sm:$0xff]  ;;  %v392_v5 = vld [vmem:[%s2252_s18 + $0x50] sm:$0xff]  ;;  %v393_v8 = vld [vmem:[%s2252_s18 + $0x58] sm:$0xff] }
  0x7c   : > { %v408_v6 = vld [vmem:[%s2252_s18 + $0xd0] sm:$0xff]  ;;  %v409_v9 = vld [vmem:[%s2252_s18 + $0xd8] sm:$0xff]  ;;  %v394_v10 = vld [vmem:[%s2252_s18 + $0x60] sm:$0xff] }
  0x7d   : > { %v410_v11 = vld [vmem:[%s2252_s18 + $0xe0] sm:$0xff]  ;;  %v395_v12 = vld [vmem:[%s2252_s18 + $0x68] sm:$0xff]  ;;  %v396_v14 = vld [vmem:[%s2252_s18 + $0x70] sm:$0xff] }
  0x7e   : > { %1788 = vmatpush1.bf16.msra.mxu0 %v1787_v32  ;;  %1813 = vmatpush1.bf16.msra.mxu1 %v1787_v32  ;;  %v411_v13 = vld [vmem:[%s2252_s18 + $0xe8] sm:$0xff]  ;;  %v412_v15 = vld [vmem:[%s2252_s18 + $0xf0] sm:$0xff]  ;;  %v397_v16 = vld [vmem:[%s2252_s18 + $0x78] sm:$0xff] }
  0x7f   : > { %1790 = vmatprep.subr.bf16.mxu0 %v1789_v33  ;;  %1806 = vmatprep.subr.bf16.mxu1 %v1789_v33  ;;  %v413_v17 = vld [vmem:[%s2252_s18 + $0xf8] sm:$0xff]  ;;  %v446_v21 = vld [vmem:[%s2961_s2] sm:$0x3]  ;;  %s1602_s18 = sld [smem:[#allocation8 + $0x1]] }
  0x80   : > { %v2333_v23 = vrot.slane %v446_v21, %v450_v20  ;;  %v2335_v24 = vrot.slane %v446_v21, %v454_v22  ;;  %v2342_v30 = vld [vmem:[%s2962_s3] ss:$0 sm:$0xff] }
  0x82   : > { %1792 = vmatpush1.bf16.msra.mxu0 %v1791_v38  ;;  %1814 = vmatpush1.bf16.msra.mxu1 %v1791_v38 }
  0x83   : > { %1794 = vmatprep.subr.bf16.mxu0 %v1793_v39  ;;  %1807 = vmatprep.subr.bf16.mxu1 %v1793_v39 }
  0x86   : > { %1796 = vmatpush1.bf16.msra.mxu0 %v1795_v44  ;;  %1815 = vmatpush1.bf16.msra.mxu1 %v1795_v44 }
  0x87   : > { %1798 = vmatprep.subr.bf16.mxu0 %v1797_v45  ;;  %1808 = vmatprep.subr.bf16.mxu1 %v1797_v45 }
  0x8a   : > { %1800 = vmatpush1.bf16.msra.mxu0 %v1799_v48  ;;  %1816 = vmatpush1.bf16.msra.mxu1 %v1799_v48 }
  0x8d   : > { %523 = vmatmul.mubr.f32.vlgmr.msra.gmra.mrb[0].mxu0 %v382_v49  ;;  %619 = vmatmul.mubr.f32.vlgmr.msra.gmra.mrb[0].mxu1 %v398_v50 }
  0x8e   : > { %528 = vmatprep.mubr.f32.mxu0 %v2047_v7  ;;  %624 = vmatprep.mubr.f32.mxu1 %v2047_v7 }
  0x91   : > { %529 = vmatmul.mubr.f32.gmra.mrb[2].mxu0 %v383_v51  ;;  %625 = vmatmul.mubr.f32.gmra.mrb[2].mxu1 %v399_v52 }
  0x92   : > { %534 = vmatprep.mubr.f32.mxu0 %v2047_v7  ;;  %630 = vmatprep.mubr.f32.mxu1 %v2047_v7 }
  0x95   : > { %535 = vmatmul.mubr.f32.gmra.mrb[4].mxu0 %v384_v53  ;;  %631 = vmatmul.mubr.f32.gmra.mrb[4].mxu1 %v400_v54 }
  0x96   : > { %540 = vmatprep.mubr.f32.mxu0 %v2047_v7  ;;  %636 = vmatprep.mubr.f32.mxu1 %v2047_v7 }
  0x99   : > { %541 = vmatmul.mubr.f32.gmra.mrb[6].mxu0 %v385_v55  ;;  %637 = vmatmul.mubr.f32.gmra.mrb[6].mxu1 %v401_v56 }
  0x9a   : > { %546 = vmatprep.mubr.f32.mxu0 %v2047_v7  ;;  %642 = vmatprep.mubr.f32.mxu1 %v2047_v7 }
  0x9d   : > { %547 = vmatmul.mubr.f32.gmra.mrb[8].mxu0 %v386_v57  ;;  %643 = vmatmul.mubr.f32.gmra.mrb[8].mxu1 %v402_v58 }
  0x9e   : > { %552 = vmatprep.mubr.f32.mxu0 %v2047_v7  ;;  %648 = vmatprep.mubr.f32.mxu1 %v2047_v7 }
  0xa1   : > { %553 = vmatmul.mubr.f32.gmra.mrb[10].mxu0 %v387_v59  ;;  %649 = vmatmul.mubr.f32.gmra.mrb[10].mxu1 %v403_v60  ;;  %v2358_v60 = vld [vmem:[%s2963_s4] ss:$0 sm:$0xff] }
  0xa2   : > { %558 = vmatprep.mubr.f32.mxu0 %v2047_v7  ;;  %654 = vmatprep.mubr.f32.mxu1 %v2047_v7 }
  0xa5   : > { %559 = vmatmul.mubr.f32.gmra.mrb[12].mxu0 %v388_v61  ;;  %655 = vmatmul.mubr.f32.gmra.mrb[12].mxu1 %v404_v62 }
  0xa6   : > { %564 = vmatprep.mubr.f32.mxu0 %v2047_v7  ;;  %660 = vmatprep.mubr.f32.mxu1 %v2047_v7 }
  0xa9   : > { %565 = vmatmul.mubr.f32.gmra.mrb[14].mxu0 %v389_v63  ;;  %661 = vmatmul.mubr.f32.gmra.mrb[14].mxu1 %v405_v0 }
  0xaa   : > { %570 = vmatprep.mubr.f32.mxu0 %v2047_v7  ;;  %666 = vmatprep.mubr.f32.mxu1 %v2047_v7 }
  0xad   : > { %571 = vmatmul.mubr.f32.gmra.mrb[16].mxu0 %v390_v1  ;;  %667 = vmatmul.mubr.f32.gmra.mrb[16].mxu1 %v406_v2 }
  0xae   : > { %576 = vmatprep.mubr.f32.mxu0 %v2047_v7  ;;  %672 = vmatprep.mubr.f32.mxu1 %v2047_v7 }
  0xb1   : > { %577 = vmatmul.mubr.f32.gmra.mrb[18].mxu0 %v391_v3  ;;  %673 = vmatmul.mubr.f32.gmra.mrb[18].mxu1 %v407_v4 }
  0xb2   : > { %582 = vmatprep.mubr.f32.mxu0 %v2047_v7  ;;  %678 = vmatprep.mubr.f32.mxu1 %v2047_v7 }
  0xb5   : > { %583 = vmatmul.mubr.f32.gmra.mrb[20].mxu0 %v392_v5  ;;  %679 = vmatmul.mubr.f32.gmra.mrb[20].mxu1 %v408_v6 }
  0xb6   : > { %588 = vmatprep.mubr.f32.mxu0 %v2047_v7  ;;  %684 = vmatprep.mubr.f32.mxu1 %v2047_v7 }
  0xb9   : > { %589 = vmatmul.mubr.f32.gmra.mrb[22].mxu0 %v393_v8  ;;  %685 = vmatmul.mubr.f32.gmra.mrb[22].mxu1 %v409_v9 }
  0xba   : > { %594 = vmatprep.mubr.f32.mxu0 %v2047_v7  ;;  %690 = vmatprep.mubr.f32.mxu1 %v2047_v7 }
  0xbd   : > { %595 = vmatmul.mubr.f32.gmra.mrb[24].mxu0 %v394_v10  ;;  %691 = vmatmul.mubr.f32.gmra.mrb[24].mxu1 %v410_v11 }
  0xbe   : > { %600 = vmatprep.mubr.f32.mxu0 %v2047_v7  ;;  %696 = vmatprep.mubr.f32.mxu1 %v2047_v7 }
  0xc1   : > { %601 = vmatmul.mubr.f32.gmra.mrb[26].mxu0 %v395_v12  ;;  %697 = vmatmul.mubr.f32.gmra.mrb[26].mxu1 %v411_v13 }
  0xc2   : > { %606 = vmatprep.mubr.f32.mxu0 %v2047_v7  ;;  %702 = vmatprep.mubr.f32.mxu1 %v2047_v7 }
  0xc5   : > { %607 = vmatmul.mubr.f32.gmra.mrb[28].mxu0 %v396_v14  ;;  %703 = vmatmul.mubr.f32.gmra.mrb[28].mxu1 %v412_v15 }
  0xc6   : > { %612 = vmatprep.mubr.f32.mxu0 %v2047_v7  ;;  %708 = vmatprep.mubr.f32.mxu1 %v2047_v7 }
  0xc9   : > { %613 = vmatmul.mubr.f32.gmra.mrb[30].mxu0 %v397_v16  ;;  %709 = vmatmul.mubr.f32.gmra.mrb[30].mxu1 %v413_v17 }
 0x160   : > { %v524_v25 = vpop.f32.mrb[0].mxu0  ;;  %v620_v26 = vpop.f32.mrb[0].mxu1 }
 0x161   : > { %v525_v27 = vadd.f32 %v524_v25, %v2333_v23  ;;  %v621_v7 = vadd.f32 %v620_v26, %v2333_v23  ;;  %v526_v28 = vpop.f32.mrb[1].mxu0  ;;  %v622_v29 = vpop.f32.mrb[1].mxu1 }
 0x162   : > { %v527_v33 = vadd.f32 %v526_v28, %v2335_v24  ;;  %v623_v40 = vadd.f32 %v622_v29, %v2335_v24 }
 0x163   : > { %v779_v31 = vmul.f32 0.2, %v525_v27  ;;  %v811_v32 = vmul.f32 0.2, %v621_v7  ;;  %vm715_vm0 = vcmp.gt.f32.partialorder %v525_v27, 0.0  ;;  %vm747_vm1 = vcmp.gt.f32.partialorder %v621_v7, 0.0 }
 0x164   : > { %v530_v34 = vpop.f32.mrb[2].mxu0  ;;  %v626_v35 = vpop.f32.mrb[2].mxu1  ;;  %v780_v44 = vmul.f32 0.2, %v527_v33  ;;  %vm716_vm3 = vcmp.gt.f32.partialorder %v527_v33, 0.0  ;;  %vm748_vm6 = vcmp.gt.f32.partialorder %v623_v40, 0.0 }
 0x165   : > { %v627_v36 = vadd.f32 %v626_v35, %v2333_v23  ;;  %v532_v37 = vpop.f32.mrb[3].mxu0  ;;  %v628_v38 = vpop.f32.mrb[3].mxu1  ;;  %v843_v39 = vsel %vm715_vm0, %v525_v27, %v779_v31  ;;  %v875_v46 = vsel %vm747_vm1, %v621_v7, %v811_v32  ;;  %v812_v57 = vmul.f32 0.2, %v623_v40 }
 0x166   : > { %v533_v41 = vadd.f32 %v532_v37, %v2335_v24  ;;  %v629_v42 = vadd.f32 %v628_v38, %v2335_v24  ;;  %v914_v43 = vmul.f32 %v2342_v30, %v843_v39  ;;  %v930_v55 = vmul.f32 %v2342_v30, %v875_v46 }
 0x167   : > { %v813_v45 = vmul.f32 0.2, %v627_v36  ;;  %vm749_vm2 = vcmp.gt.f32.partialorder %v627_v36, 0.0  ;;  %v531_v58 = vadd.f32 %v530_v34, %v2333_v23  ;;  %v844_v61 = vsel %vm716_vm3, %v527_v33, %v780_v44 }
 0x168   : > { %v782_v47 = vmul.f32 0.2, %v533_v41  ;;  %946 = vadd.xlane.f32.xlu0 %v914_v43  ;;  %v536_v48 = vpop.f32.mrb[4].mxu0  ;;  %v632_v49 = vpop.f32.mrb[4].mxu1  ;;  %vm718_vm4 = vcmp.gt.f32.partialorder %v533_v41, 0.0  ;;  %vm750_vm5 = vcmp.gt.f32.partialorder %v629_v42, 0.0  ;;  %v1051_v6 = vmul.f32 %v2358_v60, %v844_v61 }
 0x169   : > { %v877_v50 = vsel %vm749_vm2, %v627_v36, %v813_v45  ;;  %v538_v51 = vpop.f32.mrb[5].mxu0  ;;  %v634_v52 = vpop.f32.mrb[5].mxu1  ;;  %v814_v53 = vmul.f32 0.2, %v629_v42  ;;  %v537_v59 = vadd.f32 %v536_v48, %v2333_v23  ;;  %v633_v2 = vadd.f32 %v632_v49, %v2333_v23 }
 0x16a   : > { %v931_v54 = vmul.f32 %v2342_v30, %v877_v50  ;;  %v846_v56 = vsel %vm718_vm4, %v533_v41, %v782_v47  ;;  %v539_v4 = vadd.f32 %v538_v51, %v2335_v24  ;;  %v781_v9 = vmul.f32 0.2, %v531_v58 }
 0x16b   : > { %v1677_v63 = vpack.c.bf16 %v846_v56, %v844_v61  ;;  %v1052_v5 = vmul.f32 %v2358_v60, %v846_v56  ;;  %v878_v8 = vsel %vm750_vm5, %v629_v42, %v814_v53  ;;  %v783_v10 = vmul.f32 0.2, %v537_v59 }
 0x16c   : > { %980 = vadd.xlane.f32.xlu1 %v931_v54  ;;  %978 = vadd.xlane.f32.xlu0 %v930_v55  ;;  %v542_v62 = vpop.f32.mrb[6].mxu0  ;;  %v638_v0 = vpop.f32.mrb[6].mxu1  ;;  %v876_v12 = vsel %vm748_vm6, %v623_v40, %v812_v57  ;;  %vm719_vm7 = vcmp.gt.f32.partialorder %v537_v59, 0.0  ;;  %v815_v16 = vmul.f32 0.2, %v633_v2  ;;  %v635_v17 = vadd.f32 %v634_v52, %v2335_v24 }
 0x16d   : > { %v544_v1 = vpop.f32.mrb[7].mxu0  ;;  %v640_v3 = vpop.f32.mrb[7].mxu1  ;;  %1678 = vst [vmem:[%s2364_s24] sm:$0xff] %v1677_v63   ;;  %v543_v11 = vadd.f32 %v542_v62, %v2333_v23  ;;  %v1717_v13 = vpack.c.bf16 %v878_v8, %v876_v12  ;;  %vm717_vm8 = vcmp.gt.f32.partialorder %v531_v58, 0.0  ;;  %v784_v20 = vmul.f32 0.2, %v539_v4 }
 0x16e   : > { %v545_v15 = vadd.f32 %v544_v1, %v2335_v24  ;;  %v639_v21 = vadd.f32 %v638_v0, %v2333_v23  ;;  %v1068_v22 = vmul.f32 %v2358_v60, %v878_v8  ;;  %v1067_v25 = vmul.f32 %v2358_v60, %v876_v12 }
 0x16f   : > { %1761 = vst [vmem:[%s2364_s24 + $0x40] sm:$0xff] %v1717_v13   ;;  %v785_v27 = vmul.f32 0.2, %v543_v11  ;;  %v641_v7 = vadd.f32 %v640_v3, %v2335_v24  ;;  %v847_v28 = vsel %vm719_vm7, %v537_v59, %v783_v10  ;;  %v845_v29 = vsel %vm717_vm8, %v531_v58, %v781_v9 }
 0x170   : > { %1085 = vadd.xlane.f32.xlu1 %v1052_v5  ;;  %1083 = vadd.xlane.f32.xlu0 %v1051_v6  ;;  %v548_v14 = vpop.f32.mrb[8].mxu0  ;;  %v644_v19 = vpop.f32.mrb[8].mxu1  ;;  %vm721_vm9 = vcmp.gt.f32.partialorder %v543_v11, 0.0  ;;  %vm751_vm10 = vcmp.gt.f32.partialorder %v633_v2, 0.0  ;;  %v786_v33 = vmul.f32 0.2, %v545_v15  ;;  %v916_v38 = vmul.f32 %v2342_v30, %v847_v28 }
 0x171   : > { %v550_v18 = vpop.f32.mrb[9].mxu0  ;;  %v646_v26 = vpop.f32.mrb[9].mxu1  ;;  %vm720_vm11 = vcmp.gt.f32.partialorder %v539_v4, 0.0  ;;  %v816_v36 = vmul.f32 0.2, %v635_v17  ;;  %v915_v39 = vmul.f32 %v2342_v30, %v845_v29  ;;  %v849_v41 = vsel %vm721_vm9, %v543_v11, %v785_v27 }
 0x172   : > { %v817_v37 = vmul.f32 0.2, %v639_v21  ;;  %v818_v40 = vmul.f32 0.2, %v641_v7  ;;  %v879_v42 = vsel %vm751_vm10, %v633_v2, %v815_v16  ;;  %v848_v43 = vsel %vm720_vm11, %v539_v4, %v784_v20 }
 0x173   : > { %vm753_vm12 = vcmp.gt.f32.partialorder %v639_v21, 0.0  ;;  %vm722_vm13 = vcmp.gt.f32.partialorder %v545_v15, 0.0  ;;  %v551_v46 = vadd.f32 %v550_v18, %v2335_v24  ;;  %vm752_vm14 = vcmp.gt.f32.partialorder %v635_v17, 0.0 }
 0x174   : > { %1117 = vadd.xlane.f32.xlu1 %v1068_v22  ;;  %1115 = vadd.xlane.f32.xlu0 %v1067_v25  ;;  %v554_v31 = vpop.f32.mrb[10].mxu0  ;;  %v650_v32 = vpop.f32.mrb[10].mxu1  ;;  %v850_v47 = vsel %vm722_vm13, %v545_v15, %v786_v33  ;;  %vm754_vm15 = vcmp.gt.f32.partialorder %v641_v7, 0.0  ;;  %v917_v50 = vmul.f32 %v2342_v30, %v849_v41  ;;  %v932_v51 = vmul.f32 %v2342_v30, %v879_v42 }
 0x175   : > { %v556_v34 = vpop.f32.mrb[11].mxu0  ;;  %v652_v35 = vpop.f32.mrb[11].mxu1  ;;  %v1682_v52 = vpack.c.bf16 %v850_v47, %v848_v43  ;;  %v880_v53 = vsel %vm752_vm14, %v635_v17, %v816_v36  ;;  %v549_v54 = vadd.f32 %v548_v14, %v2333_v23  ;;  %v881_v55 = vsel %vm753_vm12, %v639_v21, %v817_v37 }
 0x176   : > { %v882_v56 = vsel %vm754_vm15, %v641_v7, %v818_v40  ;;  %v557_v57 = vadd.f32 %v556_v34, %v2335_v24  ;;  %v647_v58 = vadd.f32 %v646_v26, %v2335_v24  ;;  %v645_v63 = vadd.f32 %v644_v19, %v2333_v23 }
 0x177   : > { %1754 = vst [vmem:[%s2364_s24 + $0x8] sm:$0xff] %v1682_v52   ;;  %v1722_v59 = vpack.c.bf16 %v882_v56, %v880_v53  ;;  %v653_v0 = vadd.f32 %v652_v35, %v2335_v24  ;;  %v788_v3 = vmul.f32 0.2, %v551_v46  ;;  %v555_v4 = vadd.f32 %v554_v31, %v2333_v23 }
 0x178   : > { %950 = vadd.xlane.f32.xlu1 %v916_v38  ;;  %948 = vadd.xlane.f32.xlu0 %v915_v39  ;;  %v2378_v44 = vpop.f32.mrb[12].mxu0  ;;  %v2380_v45 = vpop.f32.mrb[12].mxu1  ;;  %v933_v5 = vmul.f32 %v2342_v30, %v881_v55  ;;  %v1053_v6 = vmul.f32 %v2358_v60, %v848_v43  ;;  %v787_v8 = vmul.f32 0.2, %v549_v54  ;;  %v790_v9 = vmul.f32 0.2, %v557_v57 }
 0x179   : > { %v562_v48 = vpop.f32.mrb[13].mxu0  ;;  %v2383_v49 = vpop.f32.mrb[13].mxu1  ;;  %1762 = vst [vmem:[%s2364_s24 + $0x48] sm:$0xff] %v1722_v59   ;;  %v820_v10 = vmul.f32 0.2, %v647_v58  ;;  %vm723_vm0 = vcmp.gt.f32.partialorder %v549_v54, 0.0  ;;  %v651_v13 = vadd.f32 %v650_v32, %v2333_v23  ;;  %v1054_v17 = vmul.f32 %v2358_v60, %v850_v47 }
 0x17a   : > { %v819_v12 = vmul.f32 0.2, %v645_v63  ;;  %v822_v14 = vmul.f32 0.2, %v653_v0  ;;  %vm724_vm1 = vcmp.gt.f32.partialorder %v551_v46, 0.0  ;;  %v1069_v18 = vmul.f32 %v2358_v60, %v880_v53 }
 0x17b   : > { %v789_v16 = vmul.f32 0.2, %v555_v4  ;;  %v852_v19 = vsel %vm724_vm1, %v551_v46, %v788_v3  ;;  %v851_v21 = vsel %vm723_vm0, %v549_v54, %v787_v8  ;;  %vm726_vm2 = vcmp.gt.f32.partialorder %v557_v57, 0.0 }
 0x17c   : > { %952 = vadd.xlane.f32.xlu1 %v917_v50  ;;  %982 = vadd.xlane.f32.xlu0 %v932_v51  ;;  %v2391_v61 = vpop.f32.mrb[14].mxu0  ;;  %v2393_v62 = vpop.f32.mrb[14].mxu1  ;;  %vm756_vm3 = vcmp.gt.f32.partialorder %v647_v58, 0.0  ;;  %vm758_vm4 = vcmp.gt.f32.partialorder %v653_v0, 0.0  ;;  %vm725_vm5 = vcmp.gt.f32.partialorder %v555_v4, 0.0  ;;  %vm755_vm6 = vcmp.gt.f32.partialorder %v645_v63, 0.0 }
 0x17d   : > { %v568_v1 = vpop.f32.mrb[15].mxu0  ;;  %v664_v2 = vpop.f32.mrb[15].mxu1  ;;  %v2412_v25 = vsel %vm726_vm2, %v557_v57, %v790_v9  ;;  %v2414_v26 = vsel %vm756_vm3, %v647_v58, %v820_v10  ;;  %v821_v28 = vmul.f32 0.2, %v651_v13  ;;  %v563_v29 = vadd.f32 %v562_v48, %v2335_v24 }
 0x17e   : > { %v1687_v31 = vpack.c.bf16 %v2412_v25, %v852_v19  ;;  %v2422_v32 = vsel %vm758_vm4, %v653_v0, %v822_v14  ;;  %v1070_v35 = vmul.f32 %v2358_v60, %v882_v56  ;;  %v918_v36 = vmul.f32 %v2342_v30, %v851_v21 }
 0x17f   : > { %v569_v37 = vadd.f32 %v568_v1, %v2335_v24  ;;  %v1727_v38 = vpack.c.bf16 %v2422_v32, %v2414_v26  ;;  %v853_v39 = vsel %vm725_vm5, %v555_v4, %v789_v16  ;;  %v883_v40 = vsel %vm755_vm6, %v645_v63, %v819_v12 }
 0x180   : > { %984 = vadd.xlane.f32.xlu1 %v933_v5  ;;  %1087 = vadd.xlane.f32.xlu0 %v1053_v6  ;;  %v2401_v11 = vpop.f32.mrb[16].mxu0  ;;  %v2408_v20 = vpop.f32.mrb[16].mxu1  ;;  %v659_v41 = vadd.f32 %v2383_v49, %v2335_v24  ;;  %vm757_vm7 = vcmp.gt.f32.partialorder %v651_v13, 0.0  ;;  %1755 = vst [vmem:[%s2364_s24 + $0x10] sm:$0xff] %v1687_v31   ;;  %v665_v42 = vadd.f32 %v664_v2, %v2335_v24  ;;  %v792_v47 = vmul.f32 0.2, %v563_v29 }
 0x181   : > { %v2404_v15 = vpop.f32.mrb[17].mxu0  ;;  %v2410_v22 = vpop.f32.mrb[17].mxu1  ;;  %1763 = vst [vmem:[%s2364_s24 + $0x50] sm:$0xff] %v1727_v38   ;;  %v919_v51 = vmul.f32 %v2342_v30, %v853_v39  ;;  %v934_v49 = vmul.f32 %v2342_v30, %v883_v40  ;;  %v794_v52 = vmul.f32 0.2, %v569_v37  ;;  %v885_v53 = vsel %vm757_vm7, %v651_v13, %v821_v28 }
 0x182   : > { %v561_v54 = vadd.f32 %v2378_v44, %v2333_v23  ;;  %v824_v55 = vmul.f32 0.2, %v659_v41  ;;  %vm728_vm8 = vcmp.gt.f32.partialorder %v563_v29, 0.0  ;;  %v567_v56 = vadd.f32 %v2391_v61, %v2333_v23 }
 0x183   : > { %v826_v57 = vmul.f32 0.2, %v665_v42  ;;  %v657_v58 = vadd.f32 %v2380_v45, %v2333_v23  ;;  %v935_v59 = vmul.f32 %v2342_v30, %v885_v53  ;;  %v2453_v63 = vsel %vm728_vm8, %v563_v29, %v792_v47 }
 0x184   : > { %1089 = vadd.xlane.f32.xlu1 %v1054_v17  ;;  %1119 = vadd.xlane.f32.xlu0 %v1069_v18  ;;  %v2416_v27 = vpop.f32.mrb[18].mxu0  ;;  %v2418_v7 = vpop.f32.mrb[18].mxu1  ;;  %vm730_vm9 = vcmp.gt.f32.partialorder %v569_v37, 0.0  ;;  %v1055_v44 = vmul.f32 %v2358_v60, %v852_v19  ;;  %vm760_vm10 = vcmp.gt.f32.partialorder %v659_v41, 0.0  ;;  %vm762_vm11 = vcmp.gt.f32.partialorder %v665_v42, 0.0 }
 0x185   : > { %v580_v33 = vpop.f32.mrb[19].mxu0  ;;  %v676_v34 = vpop.f32.mrb[19].mxu1  ;;  %v2460_v2 = vsel %vm730_vm9, %v569_v37, %v794_v52  ;;  %v791_v45 = vmul.f32 0.2, %v561_v54  ;;  %v575_v4 = vadd.f32 %v2404_v15, %v2335_v24  ;;  %v2470_v6 = vsel %vm760_vm10, %v659_v41, %v824_v55 }
 0x186   : > { %v1692_v5 = vpack.c.bf16 %v2460_v2, %v2453_v63  ;;  %vm727_vm12 = vcmp.gt.f32.partialorder %v561_v54, 0.0  ;;  %v2472_v8 = vsel %vm762_vm11, %v665_v42, %v826_v57  ;;  %v793_v12 = vmul.f32 0.2, %v567_v56 }
 0x187   : > { %v581_v13 = vadd.f32 %v580_v33, %v2335_v24  ;;  %v671_v14 = vadd.f32 %v2410_v22, %v2335_v24  ;;  %v1732_v15 = vpack.c.bf16 %v2472_v8, %v2470_v6  ;;  %v823_v18 = vmul.f32 0.2, %v657_v58 }
 0x188   : > { %1121 = vadd.xlane.f32.xlu1 %v1070_v35  ;;  %954 = vadd.xlane.f32.xlu0 %v918_v36  ;;  %v2436_v43 = vpop.f32.mrb[20].mxu0  ;;  %v2438_v46 = vpop.f32.mrb[20].mxu1  ;;  %1756 = vst [vmem:[%s2364_s24 + $0x18] sm:$0xff] %v1692_v5   ;;  %v1056_v19 = vmul.f32 %v2358_v60, %v2412_v25  ;;  %v1071_v21 = vmul.f32 %v2358_v60, %v2414_v26  ;;  %v796_v31 = vmul.f32 0.2, %v575_v4  ;;  %vm729_vm13 = vcmp.gt.f32.partialorder %v567_v56, 0.0 }
 0x189   : > { %v2440_v48 = vpop.f32.mrb[21].mxu0  ;;  %v2442_v50 = vpop.f32.mrb[21].mxu1  ;;  %v677_v28 = vadd.f32 %v676_v34, %v2335_v24  ;;  %v663_v22 = vadd.f32 %v2393_v62, %v2333_v23  ;;  %v855_v29 = vsel %vm727_vm12, %v561_v54, %v791_v45  ;;  %1764 = vst [vmem:[%s2364_s24 + $0x58] sm:$0xff] %v1732_v15   ;;  %vm759_vm14 = vcmp.gt.f32.partialorder %v657_v58, 0.0 }
 0x18a   : > { %v1072_v25 = vmul.f32 %v2358_v60, %v2422_v32  ;;  %v798_v26 = vmul.f32 0.2, %v581_v13  ;;  %v828_v34 = vmul.f32 0.2, %v671_v14  ;;  %v920_v37 = vmul.f32 %v2342_v30, %v855_v29 }
 0x18b   : > { %v857_v38 = vsel %vm729_vm13, %v567_v56, %v793_v12  ;;  %v830_v39 = vmul.f32 0.2, %v677_v28  ;;  %vm732_vm15 = vcmp.gt.f32.partialorder %v575_v4, 0.0  ;;  %v825_v40 = vmul.f32 0.2, %v663_v22 }
 0x18c   : > { %956 = vadd.xlane.f32.xlu1 %v919_v51  ;;  %986 = vadd.xlane.f32.xlu0 %v934_v49  ;;  %v2455_v0 = vpop.f32.mrb[22].mxu0  ;;  %v2457_v1 = vpop.f32.mrb[22].mxu1  ;;  %v887_v41 = vsel %vm759_vm14, %v657_v58, %v823_v18  ;;  %v2508_v42 = vsel %vm732_vm15, %v575_v4, %v796_v31  ;;  %v573_v32 = vadd.f32 %v2401_v11, %v2333_v23  ;;  %vm761_vm0 = vcmp.gt.f32.partialorder %v663_v22, 0.0 }
 0x18d   : > { %v2462_v61 = vpop.f32.mrb[23].mxu0  ;;  %v2464_v3 = vpop.f32.mrb[23].mxu1  ;;  %vm734_vm1 = vcmp.gt.f32.partialorder %v581_v13, 0.0  ;;  %vm764_vm2 = vcmp.gt.f32.partialorder %v671_v14, 0.0  ;;  %v921_v49 = vmul.f32 %v2342_v30, %v857_v38  ;;  %vm766_vm3 = vcmp.gt.f32.partialorder %v677_v28, 0.0 }
 0x18e   : > { %v2517_v52 = vsel %vm734_vm1, %v581_v13, %v798_v26  ;;  %v2519_v53 = vsel %vm764_vm2, %v671_v14, %v828_v34  ;;  %v936_v11 = vmul.f32 %v2342_v30, %v887_v41  ;;  %v587_v56 = vadd.f32 %v2440_v48, %v2335_v24 }
 0x18f   : > { %v1697_v57 = vpack.c.bf16 %v2517_v52, %v2508_v42  ;;  %v2530_v58 = vsel %vm766_vm3, %v677_v28, %v830_v39  ;;  %v593_v45 = vadd.f32 %v2462_v61, %v2335_v24  ;;  %v669_v48 = vadd.f32 %v2408_v20, %v2333_v23 }
 0x190   : > { %988 = vadd.xlane.f32.xlu1 %v935_v59  ;;  %1091 = vadd.xlane.f32.xlu0 %v1055_v44  ;;  %v2474_v9 = vpop.f32.mrb[24].mxu0  ;;  %v2476_v10 = vpop.f32.mrb[24].mxu1  ;;  %v579_v59 = vadd.f32 %v2416_v27, %v2333_v23  ;;  %v889_v44 = vsel %vm761_vm0, %v663_v22, %v825_v40  ;;  %v1737_v4 = vpack.c.bf16 %v2530_v58, %v2519_v53  ;;  %v795_v18 = vmul.f32 0.2, %v573_v32 }
 0x191   : > { %v2484_v16 = vpop.f32.mrb[25].mxu0  ;;  %v2486_v17 = vpop.f32.mrb[25].mxu1  ;;  %v683_v5 = vadd.f32 %v2442_v50, %v2335_v24  ;;  %1757 = vst [vmem:[%s2364_s24 + $0x20] sm:$0xff] %v1697_v57   ;;  %v675_v13 = vadd.f32 %v2418_v7, %v2333_v23  ;;  %v689_v61 = vadd.f32 %v2464_v3, %v2335_v24  ;;  %v937_v20 = vmul.f32 %v2342_v30, %v889_v44 }
 0x192   : > { %1765 = vst [vmem:[%s2364_s24 + $0x60] sm:$0xff] %v1737_v4   ;;  %v1057_v50 = vmul.f32 %v2358_v60, %v2453_v63  ;;  %vm731_vm4 = vcmp.gt.f32.partialorder %v573_v32, 0.0  ;;  %v802_v28 = vmul.f32 0.2, %v593_v45  ;;  %v827_v22 = vmul.f32 0.2, %v669_v48 }
 0x193   : > { %v832_v7 = vmul.f32 0.2, %v683_v5  ;;  %vm736_vm5 = vcmp.gt.f32.partialorder %v587_v56, 0.0  ;;  %v829_v3 = vmul.f32 0.2, %v675_v13  ;;  %v1058_v29 = vmul.f32 %v2358_v60, %v2460_v2 }
 0x194   : > { %1093 = vadd.xlane.f32.xlu1 %v1056_v19  ;;  %1123 = vadd.xlane.f32.xlu0 %v1071_v21  ;;  %v2497_v33 = vpop.f32.mrb[26].mxu0  ;;  %v2499_v35 = vpop.f32.mrb[26].mxu1  ;;  %v800_v19 = vmul.f32 0.2, %v587_v56  ;;  %v797_v21 = vmul.f32 0.2, %v579_v59  ;;  %v1073_v31 = vmul.f32 %v2358_v60, %v2470_v6  ;;  %v1074_v63 = vmul.f32 %v2358_v60, %v2472_v8 }
 0x195   : > { %v2503_v36 = vpop.f32.mrb[27].mxu0  ;;  %v2505_v62 = vpop.f32.mrb[27].mxu1  ;;  %v859_v26 = vsel %vm731_vm4, %v573_v32, %v795_v18  ;;  %vm738_vm6 = vcmp.gt.f32.partialorder %v593_v45, 0.0  ;;  %vm733_vm7 = vcmp.gt.f32.partialorder %v579_v59, 0.0  ;;  %vm768_vm8 = vcmp.gt.f32.partialorder %v683_v5, 0.0 }
 0x196   : > { %v2564_v34 = vsel %vm736_vm5, %v587_v56, %v800_v19  ;;  %vm770_vm9 = vcmp.gt.f32.partialorder %v689_v61, 0.0  ;;  %vm763_vm10 = vcmp.gt.f32.partialorder %v669_v48, 0.0  ;;  %v599_v2 = vadd.f32 %v2484_v16, %v2335_v24 }
 0x197   : > { %v2572_v8 = vsel %vm768_vm8, %v683_v5, %v832_v7  ;;  %v922_v38 = vmul.f32 %v2342_v30, %v859_v26  ;;  %vm765_vm11 = vcmp.gt.f32.partialorder %v675_v13, 0.0  ;;  %v605_v39 = vadd.f32 %v2503_v36, %v2335_v24 }
 0x198   : > { %1125 = vadd.xlane.f32.xlu1 %v1072_v25  ;;  %958 = vadd.xlane.f32.xlu0 %v920_v37  ;;  %v2512_v47 = vpop.f32.mrb[28].mxu0  ;;  %v2514_v51 = vpop.f32.mrb[28].mxu1  ;;  %v834_v25 = vmul.f32 0.2, %v689_v61  ;;  %v2566_v37 = vsel %vm738_vm6, %v593_v45, %v802_v28  ;;  %v861_v41 = vsel %vm733_vm7, %v579_v59, %v797_v21  ;;  %v695_v32 = vadd.f32 %v2486_v17, %v2335_v24 }
 0x199   : > { %v2521_v54 = vpop.f32.mrb[29].mxu0  ;;  %v2523_v55 = vpop.f32.mrb[29].mxu1  ;;  %v1702_v6 = vpack.c.bf16 %v2566_v37, %v2564_v34  ;;  %v701_v16 = vadd.f32 %v2505_v62, %v2335_v24  ;;  %v585_v56 = vadd.f32 %v2436_v43, %v2333_v23  ;;  %v893_v36 = vsel %vm765_vm11, %v675_v13, %v829_v3 }
 0x19a   : > { %v2577_v40 = vsel %vm770_vm9, %v689_v61, %v834_v25  ;;  %v804_v57 = vmul.f32 0.2, %v599_v2  ;;  %v923_v59 = vmul.f32 %v2342_v30, %v861_v41  ;;  %v806_v44 = vmul.f32 0.2, %v605_v39 }
 0x19b   : > { %1758 = vst [vmem:[%s2364_s24 + $0x28] sm:$0xff] %v1702_v6   ;;  %v836_v45 = vmul.f32 0.2, %v695_v32  ;;  %v838_v62 = vmul.f32 0.2, %v701_v16  ;;  %vm740_vm12 = vcmp.gt.f32.partialorder %v599_v2, 0.0  ;;  %v591_v4 = vadd.f32 %v2455_v0, %v2333_v23 }
 0x19c   : > { %960 = vadd.xlane.f32.xlu1 %v921_v49  ;;  %990 = vadd.xlane.f32.xlu0 %v936_v11  ;;  %v2544_v12 = vpop.f32.mrb[30].mxu0  ;;  %v2546_v27 = vpop.f32.mrb[30].mxu1  ;;  %v1742_v49 = vpack.c.bf16 %v2577_v40, %v2572_v8  ;;  %v891_v11 = vsel %vm763_vm10, %v669_v48, %v827_v22  ;;  %v681_v48 = vadd.f32 %v2438_v46, %v2333_v23  ;;  %v799_v13 = vmul.f32 0.2, %v585_v56 }
 0x19d   : > { %v616_v14 = vpop.f32.mrb[31].mxu0  ;;  %v2553_v15 = vpop.f32.mrb[31].mxu1  ;;  %v938_v17 = vmul.f32 %v2342_v30, %v891_v11  ;;  %v939_v5 = vmul.f32 %v2342_v30, %v893_v36  ;;  %v1059_v43 = vmul.f32 %v2358_v60, %v2508_v42  ;;  %v611_v61 = vadd.f32 %v2521_v54, %v2335_v24 }
 0x19e   : > { %1766 = vst [vmem:[%s2364_s24 + $0x68] sm:$0xff] %v1742_v49   ;;  %v617_v18 = vadd.f32 %v616_v14, %v2335_v24  ;;  %v707_v0 = vadd.f32 %v2523_v55, %v2335_v24  ;;  %vm742_vm13 = vcmp.gt.f32.partialorder %v605_v39, 0.0  ;;  %vm772_vm14 = vcmp.gt.f32.partialorder %v695_v32, 0.0 }
 0x19f   : > { %vm774_vm15 = vcmp.gt.f32.partialorder %v701_v16, 0.0  ;;  %v713_v46 = vadd.f32 %v2553_v15, %v2335_v24  ;;  %v2607_v42 = vsel %vm742_vm13, %v605_v39, %v806_v44  ;;  %vm735_vm0 = vcmp.gt.f32.partialorder %v585_v56, 0.0 }
 0x1a0   : > { %992 = vadd.xlane.f32.xlu1 %v937_v20  ;;  %1095 = vadd.xlane.f32.xlu0 %v1057_v50  ;;  %v2601_v20 = vsel %vm740_vm12, %v599_v2, %v804_v57  ;;  %v2609_v50 = vsel %vm772_vm14, %v695_v32, %v836_v45  ;;  %v2611_v19 = vsel %vm774_vm15, %v701_v16, %v838_v62  ;;  %v808_v55 = vmul.f32 0.2, %v611_v61 }
 0x1a1   : > { %v1707_v54 = vpack.c.bf16 %v2607_v42, %v2601_v20  ;;  %v810_v14 = vmul.f32 0.2, %v617_v18  ;;  %v1747_v21 = vpack.c.bf16 %v2611_v19, %v2609_v50  ;;  %v801_v28 = vmul.f32 0.2, %v591_v4 }
 0x1a2   : > { %v831_v24 = vmul.f32 0.2, %v681_v48  ;;  %v687_v15 = vadd.f32 %v2457_v1, %v2333_v23  ;;  %v840_v22 = vmul.f32 0.2, %v707_v0  ;;  %v1060_v7 = vmul.f32 %v2358_v60, %v2517_v52 }
 0x1a3   : > { %1759 = vst [vmem:[%s2364_s24 + $0x30] sm:$0xff] %v1707_v54   ;;  %v1075_v3 = vmul.f32 %v2358_v60, %v2519_v53  ;;  %1767 = vst [vmem:[%s2364_s24 + $0x70] sm:$0xff] %v1747_v21   ;;  %vm737_vm1 = vcmp.gt.f32.partialorder %v591_v4, 0.0  ;;  %vm767_vm2 = vcmp.gt.f32.partialorder %v681_v48, 0.0  ;;  %vm744_vm3 = vcmp.gt.f32.partialorder %v611_v61, 0.0 }
 0x1a4   : > { %1097 = vadd.xlane.f32.xlu1 %v1058_v29  ;;  %1127 = vadd.xlane.f32.xlu0 %v1073_v31  ;;  %v863_v29 = vsel %vm735_vm0, %v585_v56, %v799_v13  ;;  %v842_v31 = vmul.f32 0.2, %v713_v46  ;;  %vm746_vm4 = vcmp.gt.f32.partialorder %v617_v18, 0.0  ;;  %v2625_v25 = vsel %vm744_vm3, %v611_v61, %v808_v55 }
 0x1a5   : > { %v2627_v1 = vsel %vm746_vm4, %v617_v18, %v810_v14  ;;  %vm776_vm5 = vcmp.gt.f32.partialorder %v707_v0, 0.0  ;;  %vm778_vm6 = vcmp.gt.f32.partialorder %v713_v46, 0.0  ;;  %v924_v26 = vmul.f32 %v2342_v30, %v863_v29 }
 0x1a6   : > { %v1712_v52 = vpack.c.bf16 %v2627_v1, %v2625_v25  ;;  %v2631_v53 = vsel %vm776_vm5, %v707_v0, %v840_v22  ;;  %v2636_v2 = vsel %vm778_vm6, %v713_v46, %v842_v31  ;;  %v833_v6 = vmul.f32 0.2, %v687_v15 }
 0x1a7   : > { %v895_v39 = vsel %vm767_vm2, %v681_v48, %v831_v24  ;;  %v1752_v41 = vpack.c.bf16 %v2636_v2, %v2631_v53  ;;  %vm769_vm7 = vcmp.gt.f32.partialorder %v687_v15, 0.0  ;;  %v597_v16 = vadd.f32 %v2474_v9, %v2333_v23 }
 0x1a8   : > { %1129 = vadd.xlane.f32.xlu1 %v1074_v63  ;;  %962 = vadd.xlane.f32.xlu0 %v922_v38  ;;  %v1076_v63 = vmul.f32 %v2358_v60, %v2530_v58  ;;  %v865_v38 = vsel %vm737_vm1, %v591_v4, %v801_v28  ;;  %1760 = vst [vmem:[%s2364_s24 + $0x38] sm:$0xff] %v1712_v52   ;;  %vm1341_vm0 = vcmask 7168   ;;  %v2722_v52 = vstv %s1602_s18 }
 0x1a9   : > { %1768 = vst [vmem:[%s2364_s24 + $0x78] sm:$0xff] %v1752_v41   ;;  %v925_v32 = vmul.f32 %v2342_v30, %v865_v38  ;;  %v940_v58 = vmul.f32 %v2342_v30, %v895_v39  ;;  %v897_v49 = vsel %vm769_vm7, %v687_v15, %v833_v6  ;;  %v1061_v56 = vmul.f32 %v2358_v60, %v2564_v34 }
 0x1aa   : > { %v941_v11 = vmul.f32 %v2342_v30, %v897_v49  ;;  %v803_v36 = vmul.f32 0.2, %v597_v16  ;;  %v603_v57 = vadd.f32 %v2497_v33, %v2333_v23  ;;  %vm739_vm8 = vcmp.gt.f32.partialorder %v597_v16, 0.0 }
 0x1ab   : > { %v1062_v9 = vmul.f32 %v2358_v60, %v2566_v37  ;;  %v1077_v44 = vmul.f32 %v2358_v60, %v2572_v8  ;;  %v699_v34 = vadd.f32 %v2499_v35, %v2333_v23  ;;  %v1063_v13 = vmul.f32 %v2358_v60, %v2601_v20 }
 0x1ac   : > { %964 = vadd.xlane.f32.xlu1 %v923_v59  ;;  %994 = vadd.xlane.f32.xlu0 %v938_v17  ;;  %v693_v59 = vadd.f32 %v2476_v10, %v2333_v23  ;;  %v805_v17 = vmul.f32 0.2, %v603_v57  ;;  %v867_v62 = vsel %vm739_vm8, %v597_v16, %v803_v36  ;;  %vm741_vm9 = vcmp.gt.f32.partialorder %v603_v57, 0.0 }
 0x1ad   : > { %v1078_v10 = vmul.f32 %v2358_v60, %v2577_v40  ;;  %v926_v33 = vmul.f32 %v2342_v30, %v867_v62  ;;  %v837_v4 = vmul.f32 0.2, %v699_v34  ;;  %vm773_vm11 = vcmp.gt.f32.partialorder %v699_v34, 0.0 }
 0x1ae   : > { %v835_v45 = vmul.f32 0.2, %v693_v59  ;;  %vm771_vm10 = vcmp.gt.f32.partialorder %v693_v59, 0.0  ;;  %v869_v37 = vsel %vm741_vm9, %v603_v57, %v805_v17  ;;  %v615_v18 = vadd.f32 %v2544_v12, %v2333_v23 }
 0x1af   : > { %v927_v8 = vmul.f32 %v2342_v30, %v869_v37  ;;  %v705_v0 = vadd.f32 %v2514_v51, %v2333_v23  ;;  %v1079_v46 = vmul.f32 %v2358_v60, %v2609_v50  ;;  %v711_v20 = vadd.f32 %v2546_v27, %v2333_v23 }
 0x1b0   : > { %996 = vadd.xlane.f32.xlu1 %v939_v5  ;;  %1099 = vadd.xlane.f32.xlu0 %v1059_v43  ;;  %v899_v48 = vsel %vm771_vm10, %v693_v59, %v835_v45  ;;  %v609_v5 = vadd.f32 %v2512_v47, %v2333_v23  ;;  %v901_v43 = vsel %vm773_vm11, %v699_v34, %v837_v4  ;;  %v809_v54 = vmul.f32 0.2, %v615_v18 }
 0x1b1   : > { %v942_v35 = vmul.f32 %v2342_v30, %v899_v48  ;;  %v943_v40 = vmul.f32 %v2342_v30, %v901_v43  ;;  %v1064_v47 = vmul.f32 %v2358_v60, %v2607_v42  ;;  %v839_v55 = vmul.f32 0.2, %v705_v0 }
 0x1b2   : > { %v807_v61 = vmul.f32 0.2, %v609_v5  ;;  %vm743_vm12 = vcmp.gt.f32.partialorder %v609_v5, 0.0  ;;  %vm745_vm13 = vcmp.gt.f32.partialorder %v615_v18, 0.0  ;;  %vm775_vm14 = vcmp.gt.f32.partialorder %v705_v0, 0.0 }
 0x1b3   : > { %v1080_v51 = vmul.f32 %v2358_v60, %v2611_v19  ;;  %v841_v21 = vmul.f32 0.2, %v711_v20  ;;  %v873_v42 = vsel %vm745_vm13, %v615_v18, %v809_v54  ;;  %v903_v28 = vsel %vm775_vm14, %v705_v0, %v839_v55 }
 0x1b4   : > { %1101 = vadd.xlane.f32.xlu1 %v1060_v7  ;;  %1131 = vadd.xlane.f32.xlu0 %v1075_v3  ;;  %v871_v14 = vsel %vm743_vm12, %v609_v5, %v807_v61  ;;  %vm777_vm15 = vcmp.gt.f32.partialorder %v711_v20, 0.0  ;;  %v929_v50 = vmul.f32 %v2342_v30, %v873_v42  ;;  %v944_v23 = vmul.f32 %v2342_v30, %v903_v28 }
 0x1b5   : > { %v928_v12 = vmul.f32 %v2342_v30, %v871_v14  ;;  %v905_v27 = vsel %vm777_vm15, %v711_v20, %v841_v21  ;;  %v1065_v19 = vmul.f32 %v2358_v60, %v2625_v25  ;;  %v1066_v15 = vmul.f32 %v2358_v60, %v2627_v1 }
 0x1b6   : > { %v945_v24 = vmul.f32 %v2342_v30, %v905_v27  ;;  %v1081_v22 = vmul.f32 %v2358_v60, %v2631_v53  ;;  %v1082_v7 = vmul.f32 %v2358_v60, %v2636_v2  ;;  %v2699_v30 = vstv %s1010_s26  ;;  %s1430_s26 = sshll.u32 %s2364_s24, 4  ;;  %s2048_s24 = smov [#allocation9]   ;;  %s2720_s26 = int_to_ptr.vmem [resolvable:$true] %s1430_s26 }
 0x1b7   : > { %s1964_s11 = scalar_lea.vmem %s2720_s26, 2048  ;;  %s1968_s13 = sshll.u32 %s2048_s24, 4  ;;  %s1969_s13 = int_to_ptr.vmem [resolvable:$false] %s1968_s13 }
 0x1b8   : > { %1133 = vadd.xlane.f32.xlu1 %v1076_v63  ;;  %966 = vadd.xlane.f32.xlu0 %v924_v26  ;;  %p1965_p11 = scmp.ne.s32.totalorder %s2720_s26, %s1964_s11  ;;  %s1970_s21 = scalar_lea.vmem %s1969_s13, 4096 }
 0x1b9   : > { %p1971_p6 = scmp.lt.s32.totalorder %s2720_s26, %s1969_s13  ;;  %p1972_p8 = scmp.lt.s32.totalorder %s1970_s21, %s1964_s11 }
 0x1ba   : > { %p1966_p13 = pnand %p1965_p11, %p2196_p7 }
 0x1bb   : > { %p1973_p12 = por %p1972_p8, %p1971_p6 }
 0x1bc   : > { %968 = vadd.xlane.f32.xlu1 %v925_v32  ;;  %998 = vadd.xlane.f32.xlu0 %v940_v58  ;;  %p1967_p1 = pneg %p1966_p13 }
 0x1be   : > { %p1974_p2 = pnand %p1973_p12, %p1967_p1 }
 0x1c0   : > { %1000 = vadd.xlane.f32.xlu1 %v941_v11  ;;  %1103 = vadd.xlane.f32.xlu0 %v1061_v56 }
 0x1c4   : > { %1105 = vadd.xlane.f32.xlu1 %v1062_v9  ;;  %1135 = vadd.xlane.f32.xlu0 %v1077_v44 }
 0x1c8   : > { %1137 = vadd.xlane.f32.xlu1 %v1078_v10  ;;  %970 = vadd.xlane.f32.xlu0 %v926_v33 }
 0x1cc   : > { %972 = vadd.xlane.f32.xlu1 %v927_v8  ;;  %1002 = vadd.xlane.f32.xlu0 %v942_v35 }
 0x1d0   : > { %1004 = vadd.xlane.f32.xlu1 %v943_v40  ;;  %1107 = vadd.xlane.f32.xlu0 %v1063_v13 }
 0x1d4   : > { %1109 = vadd.xlane.f32.xlu1 %v1064_v47  ;;  %1139 = vadd.xlane.f32.xlu0 %v1079_v46 }
 0x1d8   : > { %1141 = vadd.xlane.f32.xlu1 %v1080_v51  ;;  %974 = vadd.xlane.f32.xlu0 %v928_v12 }
 0x1dc   : > { %976 = vadd.xlane.f32.xlu1 %v929_v50  ;;  %1006 = vadd.xlane.f32.xlu0 %v944_v23 }
 0x1e0   : > { %1008 = vadd.xlane.f32.xlu1 %v945_v24  ;;  %1111 = vadd.xlane.f32.xlu0 %v1065_v19 }
 0x1e4   : > { %1113 = vadd.xlane.f32.xlu1 %v1066_v15  ;;  %1143 = vadd.xlane.f32.xlu0 %v1081_v22 }
 0x1e8   : > { %1145 = vadd.xlane.f32.xlu1 %v1082_v7 }
 0x1f5   : > { %v947_v3 = vpop.xlane.xlu0 %946 }
 0x1f6   : > { %v1012_v60 = vadd.f32 %v2699_v30, %v947_v3 }
 0x1f8   : > { %1342 = vst.msk [vmem:[%s2706_s17] sm:$0xff] %vm1341_vm0, %v1012_v60 }
 0x1f9   : > { %v981_v29 = vpop.xlane.xlu1 %980  ;;  %v979_v31 = vpop.xlane.xlu0 %978 }
 0x1fa   : > { %v1029_v25 = vadd.f32 %v2699_v30, %v981_v29  ;;  %v1028_v1 = vadd.f32 %v2699_v30, %v979_v31 }
 0x1fc   : > { %1359 = vst.msk [vmem:[%s2706_s17 + $0x88] sm:$0xff] %vm1341_vm0, %v1029_v25  ;;  %1358 = vst.msk [vmem:[%s2706_s17 + $0x80] sm:$0xff] %vm1341_vm0, %v1028_v1 }
 0x1fd   : > { %1977 = shalt.err (!%p1974_p2)
}
 0x1fe   : > { %s1978_s18 = scalar_lea.hbm %s2715_s16, 2048  ;;  %s1982_s24 = scalar_lea.hbm %s2965_s6, 8192 }
 0x1ff   : > { %p1979_p4 = scmp.ne.s32.totalorder %s2715_s16, %s1978_s18  ;;  %p1983_p3 = scmp.lt.u32.totalorder %s2715_s16, %s2965_s6 }
 0x200   : > { %p1984_p5 = scmp.lt.u32.totalorder %s1982_s24, %s1978_s18  ;;  %p1986_p11 = scmp.lt.u32.totalorder %s1978_s18, %s2715_s16 }
 0x201   : > { %p1980_p10 = pnand %p1979_p4, %p2196_p7 }
 0x202   : > { %p1985_p9 = por %p1984_p5, %p1983_p3 }
 0x203   : > { %p1981_p0 = pneg %p1980_p10 }
 0x204   : > { %p1987_p13 = por %p1986_p11, %p1985_p9 }
 0x206   : > { %p1988_p1 = pnand %p1987_p13, %p1981_p0 }
 0x208   : > { %1991 = shalt.err (!%p1988_p1)
}
 0x209   : > { %s2049_s11 = smov 64   ;;  %s2050_s21 = smov 4   ;;  %v1086_v53 = vpop.xlane.xlu1 %1085  ;;  %v1084_v63 = vpop.xlane.xlu0 %1083 }
 0x20a   : > { %1827 = dma.vmem_to_hbm [thread:$0]  (%p2196_p7), %s2720_s26, 2048, %s2715_s16, %s1407_s9, %s2049_s11, %s2049_s11, %s2050_s21   ;;  %v1150_v26 = vadd.f32 %v2722_v52, %v1086_v53  ;;  %v1149_v2 = vadd.f32 %v2722_v52, %v1084_v63 }
 0x20b   : > { %s2985_s22 = sshll.u32 %s2992_s14, 3 }
 0x20c   : > { %s2757_s24 = scalar_lea.vmem %s2967_s8, %s2985_s22 }
 0x20d   : > { %1375 = vst.msk [vmem:[%s2757_s24 + $0x8] sm:$0xff] %vm1341_vm0, %v1150_v26  ;;  %1374 = vst.msk [vmem:[%s2757_s24] sm:$0xff] %vm1341_vm0, %v1149_v2  ;;  %v1118_v6 = vpop.xlane.xlu1 %1117  ;;  %v1116_v38 = vpop.xlane.xlu0 %1115 }
 0x20e   : > { %v1166_v39 = vadd.f32 %v2722_v52, %v1118_v6  ;;  %v1165_v41 = vadd.f32 %v2722_v52, %v1116_v38 }
 0x210   : > { %1391 = vst.msk [vmem:[%s2757_s24 + $0x88] sm:$0xff] %vm1341_vm0, %v1166_v39  ;;  %1390 = vst.msk [vmem:[%s2757_s24 + $0x80] sm:$0xff] %vm1341_vm0, %v1165_v41 }
 0x211   : > { %v951_v32 = vpop.xlane.xlu1 %950  ;;  %v949_v58 = vpop.xlane.xlu0 %948 }
 0x212   : > { %v1014_v16 = vadd.f32 %v2699_v30, %v951_v32  ;;  %v1013_v49 = vadd.f32 %v2699_v30, %v949_v58 }
 0x214   : > { %1344 = vst.msk [vmem:[%s2706_s17 + $0x10] sm:$0xff] %vm1341_vm0, %v1014_v16  ;;  %1343 = vst.msk [vmem:[%s2706_s17 + $0x8] sm:$0xff] %vm1341_vm0, %v1013_v49 }
 0x215   : > { %v953_v11 = vpop.xlane.xlu1 %952  ;;  %v983_v56 = vpop.xlane.xlu0 %982 }
 0x216   : > { %v1015_v36 = vadd.f32 %v2699_v30, %v953_v11  ;;  %v1030_v57 = vadd.f32 %v2699_v30, %v983_v56 }
 0x218   : > { %1345 = vst.msk [vmem:[%s2706_s17 + $0x18] sm:$0xff] %vm1341_vm0, %v1015_v36  ;;  %1360 = vst.msk [vmem:[%s2706_s17 + $0x90] sm:$0xff] %vm1341_vm0, %v1030_v57 }
 0x219   : > { %v985_v59 = vpop.xlane.xlu1 %984  ;;  %v1088_v9 = vpop.xlane.xlu0 %1087 }
 0x21a   : > { %v1031_v44 = vadd.f32 %v2699_v30, %v985_v59  ;;  %v1151_v17 = vadd.f32 %v2722_v52, %v1088_v9 }
 0x21c   : > { %1361 = vst.msk [vmem:[%s2706_s17 + $0x98] sm:$0xff] %vm1341_vm0, %v1031_v44  ;;  %1376 = vst.msk [vmem:[%s2757_s24 + $0x10] sm:$0xff] %vm1341_vm0, %v1151_v17 }
 0x21d   : > { %v1090_v45 = vpop.xlane.xlu1 %1089  ;;  %v1120_v34 = vpop.xlane.xlu0 %1119 }
 0x21e   : > { %v1152_v62 = vadd.f32 %v2722_v52, %v1090_v45  ;;  %v1167_v10 = vadd.f32 %v2722_v52, %v1120_v34 }
 0x220   : > { %1377 = vst.msk [vmem:[%s2757_s24 + $0x18] sm:$0xff] %vm1341_vm0, %v1152_v62  ;;  %1392 = vst.msk [vmem:[%s2757_s24 + $0x90] sm:$0xff] %vm1341_vm0, %v1167_v10 }
 0x221   : > { %v1122_v33 = vpop.xlane.xlu1 %1121  ;;  %v955_v4 = vpop.xlane.xlu0 %954 }
 0x222   : > { %v1168_v37 = vadd.f32 %v2722_v52, %v1122_v33  ;;  %v1016_v48 = vadd.f32 %v2699_v30, %v955_v4 }
 0x224   : > { %1393 = vst.msk [vmem:[%s2757_s24 + $0x98] sm:$0xff] %vm1341_vm0, %v1168_v37  ;;  %1346 = vst.msk [vmem:[%s2706_s17 + $0x20] sm:$0xff] %vm1341_vm0, %v1016_v48 }
 0x225   : > { %v957_v8 = vpop.xlane.xlu1 %956  ;;  %v987_v35 = vpop.xlane.xlu0 %986 }
 0x226   : > { %v1017_v5 = vadd.f32 %v2699_v30, %v957_v8  ;;  %v1032_v43 = vadd.f32 %v2699_v30, %v987_v35 }
 0x228   : > { %1347 = vst.msk [vmem:[%s2706_s17 + $0x28] sm:$0xff] %vm1341_vm0, %v1017_v5  ;;  %1362 = vst.msk [vmem:[%s2706_s17 + $0xa0] sm:$0xff] %vm1341_vm0, %v1032_v43 }
 0x229   : > { %v989_v40 = vpop.xlane.xlu1 %988  ;;  %v1092_v13 = vpop.xlane.xlu0 %1091 }
 0x22a   : > { %v1033_v61 = vadd.f32 %v2699_v30, %v989_v40  ;;  %v1153_v18 = vadd.f32 %v2722_v52, %v1092_v13 }
 0x22c   : > { %1363 = vst.msk [vmem:[%s2706_s17 + $0xa8] sm:$0xff] %vm1341_vm0, %v1033_v61  ;;  %1378 = vst.msk [vmem:[%s2757_s24 + $0x20] sm:$0xff] %vm1341_vm0, %v1153_v18 }
 0x22d   : > { %v1094_v0 = vpop.xlane.xlu1 %1093  ;;  %v1124_v47 = vpop.xlane.xlu0 %1123 }
 0x22e   : > { %v1154_v46 = vadd.f32 %v2722_v52, %v1094_v0  ;;  %v1169_v54 = vadd.f32 %v2722_v52, %v1124_v47 }
 0x230   : > { %1379 = vst.msk [vmem:[%s2757_s24 + $0x28] sm:$0xff] %vm1341_vm0, %v1154_v46  ;;  %1394 = vst.msk [vmem:[%s2757_s24 + $0xa0] sm:$0xff] %vm1341_vm0, %v1169_v54 }
 0x231   : > { %v1126_v55 = vpop.xlane.xlu1 %1125  ;;  %v959_v20 = vpop.xlane.xlu0 %958 }
 0x232   : > { %v1170_v14 = vadd.f32 %v2722_v52, %v1126_v55  ;;  %v1018_v51 = vadd.f32 %v2699_v30, %v959_v20 }
 0x234   : > { %1395 = vst.msk [vmem:[%s2757_s24 + $0xa8] sm:$0xff] %vm1341_vm0, %v1170_v14  ;;  %1348 = vst.msk [vmem:[%s2706_s17 + $0x30] sm:$0xff] %vm1341_vm0, %v1018_v51 }
 0x235   : > { %v961_v12 = vpop.xlane.xlu1 %960  ;;  %v991_v21 = vpop.xlane.xlu0 %990 }
 0x236   : > { %v1019_v42 = vadd.f32 %v2699_v30, %v961_v12  ;;  %v1034_v28 = vadd.f32 %v2699_v30, %v991_v21 }
 0x238   : > { %1349 = vst.msk [vmem:[%s2706_s17 + $0x38] sm:$0xff] %vm1341_vm0, %v1019_v42  ;;  %1364 = vst.msk [vmem:[%s2706_s17 + $0xb0] sm:$0xff] %vm1341_vm0, %v1034_v28 }
 0x239   : > { %v993_v50 = vpop.xlane.xlu1 %992  ;;  %v1096_v23 = vpop.xlane.xlu0 %1095 }
 0x23a   : > { %v1035_v27 = vadd.f32 %v2699_v30, %v993_v50  ;;  %v1155_v24 = vadd.f32 %v2722_v52, %v1096_v23 }
 0x23c   : > { %1365 = vst.msk [vmem:[%s2706_s17 + $0xb8] sm:$0xff] %vm1341_vm0, %v1035_v27  ;;  %1380 = vst.msk [vmem:[%s2757_s24 + $0x30] sm:$0xff] %vm1341_vm0, %v1155_v24 }
 0x23d   : > { %v1098_v19 = vpop.xlane.xlu1 %1097  ;;  %v1128_v15 = vpop.xlane.xlu0 %1127 }
 0x23e   : > { %v1156_v22 = vadd.f32 %v2722_v52, %v1098_v19  ;;  %v1171_v7 = vadd.f32 %v2722_v52, %v1128_v15 }
 0x240   : > { %1381 = vst.msk [vmem:[%s2757_s24 + $0x38] sm:$0xff] %vm1341_vm0, %v1156_v22  ;;  %1396 = vst.msk [vmem:[%s2757_s24 + $0xb0] sm:$0xff] %vm1341_vm0, %v1171_v7 }
 0x241   : > { %v1130_v3 = vpop.xlane.xlu1 %1129  ;;  %v963_v60 = vpop.xlane.xlu0 %962 }
 0x242   : > { %v1172_v29 = vadd.f32 %v2722_v52, %v1130_v3  ;;  %v1020_v31 = vadd.f32 %v2699_v30, %v963_v60 }
 0x244   : > { %1397 = vst.msk [vmem:[%s2757_s24 + $0xb8] sm:$0xff] %vm1341_vm0, %v1172_v29  ;;  %1350 = vst.msk [vmem:[%s2706_s17 + $0x40] sm:$0xff] %vm1341_vm0, %v1020_v31 }
 0x245   : > { %v965_v25 = vpop.xlane.xlu1 %964  ;;  %v995_v1 = vpop.xlane.xlu0 %994 }
 0x246   : > { %v1021_v53 = vadd.f32 %v2699_v30, %v965_v25  ;;  %v1036_v63 = vadd.f32 %v2699_v30, %v995_v1 }
 0x248   : > { %1351 = vst.msk [vmem:[%s2706_s17 + $0x48] sm:$0xff] %vm1341_vm0, %v1021_v53  ;;  %1366 = vst.msk [vmem:[%s2706_s17 + $0xc0] sm:$0xff] %vm1341_vm0, %v1036_v63 }
 0x249   : > { %v997_v26 = vpop.xlane.xlu1 %996  ;;  %v1100_v2 = vpop.xlane.xlu0 %1099 }
 0x24a   : > { %v1037_v6 = vadd.f32 %v2699_v30, %v997_v26  ;;  %v1157_v38 = vadd.f32 %v2722_v52, %v1100_v2 }
 0x24c   : > { %1367 = vst.msk [vmem:[%s2706_s17 + $0xc8] sm:$0xff] %vm1341_vm0, %v1037_v6  ;;  %1382 = vst.msk [vmem:[%s2757_s24 + $0x40] sm:$0xff] %vm1341_vm0, %v1157_v38 }
 0x24d   : > { %v1102_v39 = vpop.xlane.xlu1 %1101  ;;  %v1132_v41 = vpop.xlane.xlu0 %1131 }
 0x24e   : > { %v1158_v32 = vadd.f32 %v2722_v52, %v1102_v39  ;;  %v1173_v58 = vadd.f32 %v2722_v52, %v1132_v41 }
 0x250   : > { %1383 = vst.msk [vmem:[%s2757_s24 + $0x48] sm:$0xff] %vm1341_vm0, %v1158_v32  ;;  %1398 = vst.msk [vmem:[%s2757_s24 + $0xc0] sm:$0xff] %vm1341_vm0, %v1173_v58 }
 0x251   : > { %v1134_v16 = vpop.xlane.xlu1 %1133  ;;  %v967_v49 = vpop.xlane.xlu0 %966 }
 0x252   : > { %v1174_v11 = vadd.f32 %v2722_v52, %v1134_v16  ;;  %v1022_v56 = vadd.f32 %v2699_v30, %v967_v49 }
 0x254   : > { %1399 = vst.msk [vmem:[%s2757_s24 + $0xc8] sm:$0xff] %vm1341_vm0, %v1174_v11  ;;  %1352 = vst.msk [vmem:[%s2706_s17 + $0x50] sm:$0xff] %vm1341_vm0, %v1022_v56 }
 0x255   : > { %v969_v36 = vpop.xlane.xlu1 %968  ;;  %v999_v57 = vpop.xlane.xlu0 %998 }
 0x256   : > { %v1023_v59 = vadd.f32 %v2699_v30, %v969_v36  ;;  %v1038_v9 = vadd.f32 %v2699_v30, %v999_v57 }
 0x258   : > { %1353 = vst.msk [vmem:[%s2706_s17 + $0x58] sm:$0xff] %vm1341_vm0, %v1023_v59  ;;  %1368 = vst.msk [vmem:[%s2706_s17 + $0xd0] sm:$0xff] %vm1341_vm0, %v1038_v9 }
 0x259   : > { %v1001_v44 = vpop.xlane.xlu1 %1000  ;;  %v1104_v17 = vpop.xlane.xlu0 %1103 }
 0x25a   : > { %v1039_v45 = vadd.f32 %v2699_v30, %v1001_v44  ;;  %v1159_v34 = vadd.f32 %v2722_v52, %v1104_v17 }
 0x25c   : > { %1369 = vst.msk [vmem:[%s2706_s17 + $0xd8] sm:$0xff] %vm1341_vm0, %v1039_v45  ;;  %1384 = vst.msk [vmem:[%s2757_s24 + $0x50] sm:$0xff] %vm1341_vm0, %v1159_v34 }
 0x25d   : > { %v1106_v62 = vpop.xlane.xlu1 %1105  ;;  %v1136_v10 = vpop.xlane.xlu0 %1135 }
 0x25e   : > { %v1160_v33 = vadd.f32 %v2722_v52, %v1106_v62  ;;  %v1175_v4 = vadd.f32 %v2722_v52, %v1136_v10 }
 0x260   : > { %1385 = vst.msk [vmem:[%s2757_s24 + $0x58] sm:$0xff] %vm1341_vm0, %v1160_v33  ;;  %1400 = vst.msk [vmem:[%s2757_s24 + $0xd0] sm:$0xff] %vm1341_vm0, %v1175_v4 }
 0x261   : > { %v1138_v37 = vpop.xlane.xlu1 %1137  ;;  %v971_v48 = vpop.xlane.xlu0 %970 }
 0x262   : > { %v1176_v8 = vadd.f32 %v2722_v52, %v1138_v37  ;;  %v1024_v35 = vadd.f32 %v2699_v30, %v971_v48 }
 0x264   : > { %1401 = vst.msk [vmem:[%s2757_s24 + $0xd8] sm:$0xff] %vm1341_vm0, %v1176_v8  ;;  %1354 = vst.msk [vmem:[%s2706_s17 + $0x60] sm:$0xff] %vm1341_vm0, %v1024_v35 }
 0x265   : > { %v973_v5 = vpop.xlane.xlu1 %972  ;;  %v1003_v43 = vpop.xlane.xlu0 %1002 }
 0x266   : > { %v1025_v40 = vadd.f32 %v2699_v30, %v973_v5  ;;  %v1040_v13 = vadd.f32 %v2699_v30, %v1003_v43 }
 0x268   : > { %1355 = vst.msk [vmem:[%s2706_s17 + $0x68] sm:$0xff] %vm1341_vm0, %v1025_v40  ;;  %1370 = vst.msk [vmem:[%s2706_s17 + $0xe0] sm:$0xff] %vm1341_vm0, %v1040_v13 }
 0x269   : > { %v1005_v61 = vpop.xlane.xlu1 %1004  ;;  %v1108_v18 = vpop.xlane.xlu0 %1107 }
 0x26a   : > { %v1041_v0 = vadd.f32 %v2699_v30, %v1005_v61  ;;  %v1161_v47 = vadd.f32 %v2722_v52, %v1108_v18 }
 0x26c   : > { %1371 = vst.msk [vmem:[%s2706_s17 + $0xe8] sm:$0xff] %vm1341_vm0, %v1041_v0  ;;  %1386 = vst.msk [vmem:[%s2757_s24 + $0x60] sm:$0xff] %vm1341_vm0, %v1161_v47 }
 0x26d   : > { %v1110_v46 = vpop.xlane.xlu1 %1109  ;;  %v1140_v54 = vpop.xlane.xlu0 %1139 }
 0x26e   : > { %v1162_v55 = vadd.f32 %v2722_v52, %v1110_v46  ;;  %v1177_v20 = vadd.f32 %v2722_v52, %v1140_v54 }
 0x270   : > { %1387 = vst.msk [vmem:[%s2757_s24 + $0x68] sm:$0xff] %vm1341_vm0, %v1162_v55  ;;  %1402 = vst.msk [vmem:[%s2757_s24 + $0xe0] sm:$0xff] %vm1341_vm0, %v1177_v20 }
 0x271   : > { %v1142_v14 = vpop.xlane.xlu1 %1141  ;;  %v975_v51 = vpop.xlane.xlu0 %974 }
 0x272   : > { %v1178_v12 = vadd.f32 %v2722_v52, %v1142_v14  ;;  %v1026_v21 = vadd.f32 %v2699_v30, %v975_v51 }
 0x274   : > { %1403 = vst.msk [vmem:[%s2757_s24 + $0xe8] sm:$0xff] %vm1341_vm0, %v1178_v12  ;;  %1356 = vst.msk [vmem:[%s2706_s17 + $0x70] sm:$0xff] %vm1341_vm0, %v1026_v21 }
 0x275   : > { %v977_v42 = vpop.xlane.xlu1 %976  ;;  %v1007_v28 = vpop.xlane.xlu0 %1006 }
 0x276   : > { %v1027_v50 = vadd.f32 %v2699_v30, %v977_v42  ;;  %v1042_v23 = vadd.f32 %v2699_v30, %v1007_v28 }
 0x278   : > { %1357 = vst.msk [vmem:[%s2706_s17 + $0x78] sm:$0xff] %vm1341_vm0, %v1027_v50  ;;  %1372 = vst.msk [vmem:[%s2706_s17 + $0xf0] sm:$0xff] %vm1341_vm0, %v1042_v23 }
 0x279   : > { %v1009_v27 = vpop.xlane.xlu1 %1008  ;;  %v1112_v24 = vpop.xlane.xlu0 %1111 }
 0x27a   : > { %v1043_v19 = vadd.f32 %v2699_v30, %v1009_v27  ;;  %v1163_v15 = vadd.f32 %v2722_v52, %v1112_v24 }
 0x27c   : > { %1373 = vst.msk [vmem:[%s2706_s17 + $0xf8] sm:$0xff] %vm1341_vm0, %v1043_v19  ;;  %1388 = vst.msk [vmem:[%s2757_s24 + $0x70] sm:$0xff] %vm1341_vm0, %v1163_v15 }
 0x27d   : > { %v1114_v22 = vpop.xlane.xlu1 %1113  ;;  %v1144_v7 = vpop.xlane.xlu0 %1143 }
 0x27e   : > { %v1164_v3 = vadd.f32 %v2722_v52, %v1114_v22  ;;  %v1179_v60 = vadd.f32 %v2722_v52, %v1144_v7 }
 0x280   : > { %1389 = vst.msk [vmem:[%s2757_s24 + $0x78] sm:$0xff] %vm1341_vm0, %v1164_v3  ;;  %1404 = vst.msk [vmem:[%s2757_s24 + $0xf0] sm:$0xff] %vm1341_vm0, %v1179_v60 }
 0x281   : > { %v1146_v29 = vpop.xlane.xlu1 %1145 }
 0x282   : > { %v1180_v31 = vadd.f32 %v2722_v52, %v1146_v29 }
 0x284   : > { %1405 = vst.msk [vmem:[%s2757_s24 + $0xf8] sm:$0xff] %vm1341_vm0, %v1180_v31 }
 0x285 PF: > { %p1849_p7 = scmp.ge.s32.totalorder %s2038_s30, 2  ;;  %s1453_s19 = sand.u32 1, %s2026_s27  }
 0x286   : > { %p2986_p6 = scmp.ne.s32.totalorder %s2973_s12, 0  ;;  %s1454_s20 = scalar_lea.sflag [#allocation4], %s1453_s19 }
 0x288   : > { %p1841_p8 = pnand %p1849_p7, %p2986_p6 }
 0x28a   : > { %2021 = dma.done.wait (!%p1841_p8), %s1454_s20, 2048  }
 0x28b   : > { %2023 = vsyncadd (!%p1841_p8), %s1454_s20, 4294965248  ;;  %p24_p12 = scmp.ge.s32.totalorder %s2186_s15, 6   ;;  %s2987_s27 = smov %s2030_s28 }
 0x28c   : > { %s2988_s28 = smov %s2034_s29  ;;  %s2989_s29 = smov %s2202_s25 }
 0x28d   : > { %s2990_s30 = smov %s2186_s15  ;;  %26 = sbr.rel (!%p24_p12) target bundleno = 7 (0x7), region = 122 }
 0x294   :  { %1475 = vsyncpa [#allocation3], 1 }
 0x295   :  { %1477 = vsyncpa [#allocation3 + $0x1], 1 }
 0x296   :  { %1478 = vsyncpa [#allocation7], 1 }
 0x297   :  { %1479 = vsyncpa [#allocation4], 1 }
 0x298   :  { %1481 = vsyncpa [#allocation4 + $0x1], 1 }
 0x299   :  { %1482 = vsyncpa [#allocation5], 1 }
 0x29a   :  { %1484 = vsyncpa [#allocation5 + $0x1], 1 }

</bundles_post_ra>
